<compile_context>
chip_gen: v7x
topology: tpu7x:2x2x1
jax: 0.10.0
libtpu: 0.0.40
codegen_flags: <defaults>
</compile_context>

<pallas_src>
import functools

import jax
import jax.numpy as jnp
from jax import lax
from jax.experimental import pallas as pl
from jax.experimental.pallas import tpu as pltpu


# ----------------------------------------------------------------------------
# Kernel. Grid = (num_time_chunks,), state carried in VMEM scratch.
# Scalar-prefetch arg:
#   maxlen_ref (1,)      int32 max(wordslen)        [SMEM]
# Inputs:
#   lens_ref   (B, 1)    int32 sequence lengths
#   tags_ref   (B, 1)    int32 class labels
#   xf_ref     (Tc*B, E) bf16 fwd inputs for this chunk (time-major)
#   xb_ref     (Tc*B, E) bf16 reversed-bwd inputs for this chunk
#   wif/wib    (E, 4H)   bf16 input->gate weights per direction (i,f,g,o cols)
#   whf/whb    (H, 4H)   bf16 hidden->gate weights per direction
#   bf/bb      (1, 4H)   f32  fused gate bias (b_ih + b_hh) per direction
#   wout_ref   (2H, Cp)  f32  classifier weight, lane-padded to Cp=128k
#   bout_ref   (1, Cp)   f32  classifier bias, padded lanes = -1e30
# Output:
#   loss_ref   (1, 1)    f32  mean cross-entropy                [SMEM]
# Scratch (persists across grid steps):
#   ginf/ginb  (Tc*B, 4H) f32 per-chunk input projections
#   h_scr/c_scr (2, B, H) f32 recurrent state, index 0 = fwd, 1 = bwd
# ----------------------------------------------------------------------------
def bilstm_ce_kernel(maxlen_ref, lens_ref, tags_ref, xf_ref, xb_ref,
                     wif_ref, wib_ref, whf_ref, whb_ref, bf_ref, bb_ref,
                     wout_ref, bout_ref, loss_ref,
                     ginf_scr, ginb_scr, h_scr, c_scr):
    B = lens_ref.shape[0]
    H = h_scr.shape[2]
    Tc = ginf_scr.shape[0] // B
    chunk = pl.program_id(0)
    t0 = chunk * Tc

    @pl.when(chunk == 0)
    def _init():
        h_scr[...] = jnp.zeros_like(h_scr)
        c_scr[...] = jnp.zeros_like(c_scr)

    # Skip chunks whose every step lies past the longest sequence.
    @pl.when(t0 < maxlen_ref[0])
    def _chunk_body():
        # -- phase 1: input projection for the whole chunk (bf16 MXU, f32 acc)
        ginf_scr[...] = (jnp.dot(xf_ref[...], wif_ref[...],
                                 preferred_element_type=jnp.float32)
                         + bf_ref[...])
        ginb_scr[...] = (jnp.dot(xb_ref[...], wib_ref[...],
                                 preferred_element_type=jnp.float32)
                         + bb_ref[...])

        whf = whf_ref[...]            # (H, 4H) bf16, hoisted out of the loop
        whb = whb_ref[...]
        lens = lens_ref[...]          # (B, 1) int32

        hf = h_scr[0]                 # (B, H) f32
        hb = h_scr[1]
        cf = c_scr[0]
        cb = c_scr[1]

        # -- phase 2: serial recurrence, statically unrolled within the chunk
        #    (the chunk grid axis bounds live ranges between unrolls).
        for t in range(Tc):
            r0 = t * B
            gf = ginf_scr[pl.ds(r0, B), :] + jnp.dot(
                hf.astype(jnp.bfloat16), whf,
                preferred_element_type=jnp.float32)            # (B, 4H)
            gb = ginb_scr[pl.ds(r0, B), :] + jnp.dot(
                hb.astype(jnp.bfloat16), whb,
                preferred_element_type=jnp.float32)            # (B, 4H)

            i_f = jax.nn.sigmoid(gf[:, 0 * H:1 * H])
            f_f = jax.nn.sigmoid(gf[:, 1 * H:2 * H])
            g_f = jnp.tanh(gf[:, 2 * H:3 * H])
            o_f = jax.nn.sigmoid(gf[:, 3 * H:4 * H])
            i_b = jax.nn.sigmoid(gb[:, 0 * H:1 * H])
            f_b = jax.nn.sigmoid(gb[:, 1 * H:2 * H])
            g_b = jnp.tanh(gb[:, 2 * H:3 * H])
            o_b = jax.nn.sigmoid(gb[:, 3 * H:4 * H])

            cf_new = f_f * cf + i_f * g_f
            cb_new = f_b * cb + i_b * g_b
            hf_new = o_f * jnp.tanh(cf_new)
            hb_new = o_b * jnp.tanh(cb_new)

            # pack_padded_sequence semantics: carry old state through padding.
            valid = lens > (t0 + t)                             # (B, 1) bool
            hf = jnp.where(valid, hf_new, hf)
            hb = jnp.where(valid, hb_new, hb)
            cf = jnp.where(valid, cf_new, cf)
            cb = jnp.where(valid, cb_new, cb)

        h_scr[0] = hf
        h_scr[1] = hb
        c_scr[0] = cf
        c_scr[1] = cb

    # -- phase 3: classifier + mean cross-entropy on the last chunk ----------
    @pl.when(chunk == pl.num_programs(0) - 1)
    def _finalize():
        feats = jnp.concatenate([h_scr[0], h_scr[1]], axis=1)   # (B, 2H)
        logits = (jnp.dot(feats, wout_ref[...],
                          preferred_element_type=jnp.float32) + bout_ref[...])
        m = jnp.max(logits, axis=1, keepdims=True)
        lse = m + jnp.log(jnp.sum(jnp.exp(logits - m), axis=1, keepdims=True))
        cls = lax.broadcasted_iota(jnp.int32, logits.shape, 1)
        tgt = jnp.sum(jnp.where(cls == tags_ref[...], logits, 0.0),
                      axis=1, keepdims=True)
        loss_ref[0, 0] = jnp.sum(lse - tgt) / B


def _vmem_limit_bytes(Tc, B, E, H, Cp):
    f32, bf16 = 4, 2
    blocks = 2 * 2 * (Tc * B * E * bf16)                       # x double-buffers
    weights = ((2 * E * 4 * H + 2 * H * 4 * H) * bf16
               + 2 * 4 * H * f32 + (2 * H * Cp + Cp) * f32)
    scratch = 2 * (Tc * B * 4 * H) * f32 + 2 * (2 * B * H) * f32
    est = blocks + weights + scratch + (1 << 20)
    # generous headroom, but never above v7x's 64 MiB physical VMEM
    return min(max(4 * est, 32 << 20), 64 << 20)


def run_bilstm_ce(maxlen, lens, tags, xf, xb, wif, wib, whf, whb, bf, bb,
                  wout, bout, *, batch, hidden, seq_len, time_chunk):
    B, H, T = batch, hidden, seq_len
    E = xf.shape[1]
    Cp = wout.shape[1]
    # largest divisor of T that is <= time_chunk (keeps the grid exact)
    Tc = max(d for d in range(1, min(time_chunk, T) + 1) if T % d == 0)
    num_chunks = T // Tc

    grid_spec = pltpu.PrefetchScalarGridSpec(
        num_scalar_prefetch=1,
        grid=(num_chunks,),
        in_specs=[
            pl.BlockSpec((B, 1), lambda c, ml: (0, 0)),           # lens
            pl.BlockSpec((B, 1), lambda c, ml: (0, 0)),           # tags
            pl.BlockSpec((Tc * B, E), lambda c, ml: (c, 0)),      # x fwd chunk
            pl.BlockSpec((Tc * B, E), lambda c, ml: (c, 0)),      # x bwd chunk
            pl.BlockSpec((E, 4 * H), lambda c, ml: (0, 0)),       # W_ih fwd
            pl.BlockSpec((E, 4 * H), lambda c, ml: (0, 0)),       # W_ih bwd
            pl.BlockSpec((H, 4 * H), lambda c, ml: (0, 0)),       # W_hh fwd
            pl.BlockSpec((H, 4 * H), lambda c, ml: (0, 0)),       # W_hh bwd
            pl.BlockSpec((1, 4 * H), lambda c, ml: (0, 0)),       # b fwd
            pl.BlockSpec((1, 4 * H), lambda c, ml: (0, 0)),       # b bwd
            pl.BlockSpec((2 * H, Cp), lambda c, ml: (0, 0)),      # W_out
            pl.BlockSpec((1, Cp), lambda c, ml: (0, 0)),          # b_out
        ],
        out_specs=pl.BlockSpec(memory_space=pltpu.MemorySpace.SMEM),
        scratch_shapes=[
            pltpu.VMEM((Tc * B, 4 * H), jnp.float32),   # gate proj fwd
            pltpu.VMEM((Tc * B, 4 * H), jnp.float32),   # gate proj bwd
            pltpu.VMEM((2, B, H), jnp.float32),         # h state [fwd, bwd]
            pltpu.VMEM((2, B, H), jnp.float32),         # c state [fwd, bwd]
        ],
    )

    loss = pl.pallas_call(
        bilstm_ce_kernel,
        out_shape=jax.ShapeDtypeStruct((1, 1), jnp.float32),
        grid_spec=grid_spec,
        compiler_params=pltpu.CompilerParams(
            dimension_semantics=("arbitrary",),
            vmem_limit_bytes=_vmem_limit_bytes(Tc, B, E, H, Cp),
        ),
    )(maxlen, lens, tags, xf, xb, wif, wib, whf, whb, bf, bb, wout, bout)
    return loss[0, 0]


@functools.partial(jax.jit, static_argnames=("hidden_dim", "time_chunk"))
def lstm_model_forward(params, words, tags, wordslen, hidden_dim, time_chunk=4):
    """Mirrors LSTM.forward(words, tags, wordslen) -> scalar CE loss."""
    B, T = words.shape
    H = hidden_dim

    # --- embedding lookup + per-length reversal (XLA glue; gather has no
    #     clean tile-structured Pallas form) ---------------------------------
    emb = jnp.take(params["embedding"], words, axis=0)            # (B, T, E)
    E = emb.shape[-1]
    x_fwd = jnp.transpose(emb, (1, 0, 2))                         # (T, B, E)
    rev_pos = jnp.clip(wordslen[:, None] - 1 - jnp.arange(T)[None, :], 0)
    emb_rev = jnp.take_along_axis(emb, rev_pos[:, :, None], axis=1)
    x_bwd = jnp.transpose(emb_rev, (1, 0, 2))                     # (T, B, E)
    xf = x_fwd.reshape(T * B, E).astype(jnp.bfloat16)
    xb = x_bwd.reshape(T * B, E).astype(jnp.bfloat16)

    lens = wordslen.astype(jnp.int32).reshape(B, 1)
    tags2 = tags.astype(jnp.int32).reshape(B, 1)
    maxlen = jnp.max(wordslen).astype(jnp.int32).reshape(1)

    # dense per-direction weights, bf16 MXU operands
    wif = params["wih_fwd_t"].astype(jnp.bfloat16)
    wib = params["wih_bwd_t"].astype(jnp.bfloat16)
    whf = params["whh_fwd_t"].astype(jnp.bfloat16)
    whb = params["whh_bwd_t"].astype(jnp.bfloat16)
    bf = params["b_fwd"]
    bb = params["b_bwd"]

    # classifier padded to lane-dense width; padded lanes get -1e30 bias so
    # they vanish under the LSE / max.
    C = params["w_out_t"].shape[1]
    Cp = ((C + 127) // 128) * 128
    wout = jnp.zeros((2 * H, Cp), jnp.float32).at[:, :C].set(params["w_out_t"])
    bout = jnp.full((1, Cp), -1e30, jnp.float32).at[:, :C].set(params["b_out"])

    return run_bilstm_ce(maxlen, lens, tags2, xf, xb, wif, wib, whf, whb,
                         bf, bb, wout, bout,
                         batch=B, hidden=H, seq_len=T, time_chunk=time_chunk)


def init_params(key, vocab, embed_dim, hidden_dim, output_size):
    ks = jax.random.split(key, 8)
    scale = 1.0 / jnp.sqrt(hidden_dim)
    u = lambda k, shape: jax.random.uniform(k, shape, jnp.float32, -scale, scale)
    params = {
        "embedding": jax.random.normal(ks[0], (vocab, embed_dim), jnp.float32),
        # stored transposed relative to PyTorch (4H, E)/(4H, H); gate order i,f,g,o
        "wih_fwd_t": u(ks[1], (embed_dim, 4 * hidden_dim)),
        "whh_fwd_t": u(ks[2], (hidden_dim, 4 * hidden_dim)),
        "b_fwd": u(ks[3], (1, 4 * hidden_dim)),   # b_ih + b_hh fused
        "wih_bwd_t": u(ks[4], (embed_dim, 4 * hidden_dim)),
        "whh_bwd_t": u(ks[5], (hidden_dim, 4 * hidden_dim)),
        "b_bwd": u(ks[6], (1, 4 * hidden_dim)),
        "w_out_t": u(ks[7], (2 * hidden_dim, output_size)),
        "b_out": jnp.zeros((1, output_size), jnp.float32),
    }
    return params


if __name__ == "__main__":
    VOCAB = 50
    EMBED_DIM = 32
    HIDDEN_DIM = 32
    OUTPUT_SIZE = 8
    BATCH = 8
    MAX_LEN = 8

    key = jax.random.PRNGKey(0)
    k_par, k_words, k_tags, k_len = jax.random.split(key, 4)

    params = init_params(k_par, VOCAB, EMBED_DIM, HIDDEN_DIM, OUTPUT_SIZE)
    words = jax.random.randint(k_words, (BATCH, MAX_LEN), 0, VOCAB, jnp.int32)
    tags = jax.random.randint(k_tags, (BATCH,), 0, OUTPUT_SIZE, jnp.int32)
    wordslen = jax.random.randint(k_len, (BATCH,), 1, MAX_LEN + 1, jnp.int32)

    loss = lstm_model_forward(params, words, tags, wordslen,
                              hidden_dim=HIDDEN_DIM, time_chunk=4)
    jax.block_until_ready(loss)
    assert jnp.isfinite(loss)
    print("KERNEL_OK")
</pallas_src>

<mosaic_0001>
module attributes {stable_mosaic.version = 11 : i64} {
  func.func @bilstm_ce_kernel(%arg0: i32, %arg1: memref<1xi32, #tpu.memory_space<smem>>, %arg2: memref<8x1xi32, #tpu.memory_space<vmem>>, %arg3: memref<8x1xi32, #tpu.memory_space<vmem>>, %arg4: memref<32x32xbf16, #tpu.memory_space<vmem>>, %arg5: memref<32x32xbf16, #tpu.memory_space<vmem>>, %arg6: memref<32x128xbf16, #tpu.memory_space<vmem>>, %arg7: memref<32x128xbf16, #tpu.memory_space<vmem>>, %arg8: memref<32x128xbf16, #tpu.memory_space<vmem>>, %arg9: memref<32x128xbf16, #tpu.memory_space<vmem>>, %arg10: memref<1x128xf32, #tpu.memory_space<vmem>>, %arg11: memref<1x128xf32, #tpu.memory_space<vmem>>, %arg12: memref<64x128xf32, #tpu.memory_space<vmem>>, %arg13: memref<1x128xf32, #tpu.memory_space<vmem>>, %arg14: memref<1x1xf32, #tpu.memory_space<smem>>, %arg15: memref<32x128xf32, #tpu.memory_space<vmem>>, %arg16: memref<32x128xf32, #tpu.memory_space<vmem>>, %arg17: memref<2x8x32xf32, #tpu.memory_space<vmem>>, %arg18: memref<2x8x32xf32, #tpu.memory_space<vmem>>) attributes {dimension_semantics = [#tpu.dimension_semantics<arbitrary>], iteration_bounds = array<i64: 2>, scalar_prefetch = 1 : i64, scratch_operands = 4 : i64, tpu.core_type = #tpu.core_type<tc>, window_params = [{pipeline_mode = #tpu.pipeline_mode<synchronous>, transform_indices = @transform_0, window_bounds = array<i64: 8, 1>}, {pipeline_mode = #tpu.pipeline_mode<synchronous>, transform_indices = @transform_1, window_bounds = array<i64: 8, 1>}, {transform_indices = @transform_2, window_bounds = array<i64: 32, 32>}, {transform_indices = @transform_3, window_bounds = array<i64: 32, 32>}, {pipeline_mode = #tpu.pipeline_mode<synchronous>, transform_indices = @transform_4, window_bounds = array<i64: 32, 128>}, {pipeline_mode = #tpu.pipeline_mode<synchronous>, transform_indices = @transform_5, window_bounds = array<i64: 32, 128>}, {pipeline_mode = #tpu.pipeline_mode<synchronous>, transform_indices = @transform_6, window_bounds = array<i64: 32, 128>}, {pipeline_mode = #tpu.pipeline_mode<synchronous>, transform_indices = @transform_7, window_bounds = array<i64: 32, 128>}, {pipeline_mode = #tpu.pipeline_mode<synchronous>, transform_indices = @transform_8, window_bounds = array<i64: 1, 128>}, {pipeline_mode = #tpu.pipeline_mode<synchronous>, transform_indices = @transform_9, window_bounds = array<i64: 1, 128>}, {pipeline_mode = #tpu.pipeline_mode<synchronous>, transform_indices = @transform_10, window_bounds = array<i64: 64, 128>}, {pipeline_mode = #tpu.pipeline_mode<synchronous>, transform_indices = @transform_11, window_bounds = array<i64: 1, 128>}, {transform_indices = @transform_12, window_bounds = array<i64: 1, 1>}]} {
    %c4_i32 = arith.constant 4 : i32
    %0 = arith.muli %arg0, %c4_i32 : i32
    %c0_i32 = arith.constant 0 : i32
    %1 = arith.cmpi eq, %arg0, %c0_i32 : i32
    %2 = arith.extui %1 : i1 to i32
    %c0_i32_0 = arith.constant 0 : i32
    %3 = arith.cmpi ne, %2, %c0_i32_0 : i32
    scf.if %3 {
      %cst = arith.constant 0.000000e+00 : f32
      %11 = vector.broadcast %cst : f32 to vector<2x8x32xf32>
      %c0_3 = arith.constant 0 : index
      %c0_4 = arith.constant 0 : index
      %c0_5 = arith.constant 0 : index
      %12 = vector.load %arg17[%c0_3, %c0_4, %c0_5] : memref<2x8x32xf32, #tpu.memory_space<vmem>>, vector<2x8x32xf32>
      tpu.vector_store %arg17[%c0_3, %c0_4, %c0_5], %11 {strides = array<i32>} : memref<2x8x32xf32, #tpu.memory_space<vmem>>, vector<2x8x32xf32>,
      %cst_6 = arith.constant 0.000000e+00 : f32
      %13 = vector.broadcast %cst_6 : f32 to vector<2x8x32xf32>
      %c0_7 = arith.constant 0 : index
      %c0_8 = arith.constant 0 : index
      %c0_9 = arith.constant 0 : index
      %14 = vector.load %arg18[%c0_7, %c0_8, %c0_9] : memref<2x8x32xf32, #tpu.memory_space<vmem>>, vector<2x8x32xf32>
      tpu.vector_store %arg18[%c0_7, %c0_8, %c0_9], %13 {strides = array<i32>} : memref<2x8x32xf32, #tpu.memory_space<vmem>>, vector<2x8x32xf32>,
    } else {
    }
    %c0 = arith.constant 0 : index
    %4 = memref.load %arg1[%c0] : memref<1xi32, #tpu.memory_space<smem>>
    %5 = arith.cmpi slt, %0, %4 : i32
    %6 = arith.extui %5 : i1 to i32
    %c0_i32_1 = arith.constant 0 : i32
    %7 = arith.cmpi ne, %6, %c0_i32_1 : i32
    scf.if %7 {
      %c0_3 = arith.constant 0 : index
      %c0_4 = arith.constant 0 : index
      %11 = vector.load %arg4[%c0_3, %c0_4] : memref<32x32xbf16, #tpu.memory_space<vmem>>, vector<32x32xbf16>
      %c0_5 = arith.constant 0 : index
      %c0_6 = arith.constant 0 : index
      %12 = vector.load %arg6[%c0_5, %c0_6] : memref<32x128xbf16, #tpu.memory_space<vmem>>, vector<32x128xbf16>
      %cst = arith.constant dense<0.000000e+00> : vector<32x128xf32>
      %13 = tpu.matmul %11, %12, %cst {dimension_numbers = #tpu.dot_dimension_numbers<[1], [0], [0], [1], [0, 0, 1, 1], [], []>} : vector<32x32xbf16>, vector<32x128xbf16>, vector<32x128xf32> -> vector<32x128xf32>
      %c0_7 = arith.constant 0 : index
      %c0_8 = arith.constant 0 : index
      %14 = vector.load %arg10[%c0_7, %c0_8] : memref<1x128xf32, #tpu.memory_space<vmem>>, vector<1x128xf32>
      %15 = vector.broadcast %14 : vector<1x128xf32> to vector<32x128xf32>
      %16 = arith.addf %13, %15 : vector<32x128xf32>
      %c0_9 = arith.constant 0 : index
      %c0_10 = arith.constant 0 : index
      %17 = vector.load %arg15[%c0_9, %c0_10] : memref<32x128xf32, #tpu.memory_space<vmem>>, vector<32x128xf32>
      tpu.vector_store %arg15[%c0_9, %c0_10], %16 {strides = array<i32>} : memref<32x128xf32, #tpu.memory_space<vmem>>, vector<32x128xf32>,
      %c0_11 = arith.constant 0 : index
      %c0_12 = arith.constant 0 : index
      %18 = vector.load %arg5[%c0_11, %c0_12] : memref<32x32xbf16, #tpu.memory_space<vmem>>, vector<32x32xbf16>
      %c0_13 = arith.constant 0 : index
      %c0_14 = arith.constant 0 : index
      %19 = vector.load %arg7[%c0_13, %c0_14] : memref<32x128xbf16, #tpu.memory_space<vmem>>, vector<32x128xbf16>
      %cst_15 = arith.constant dense<0.000000e+00> : vector<32x128xf32>
      %20 = tpu.matmul %18, %19, %cst_15 {dimension_numbers = #tpu.dot_dimension_numbers<[1], [0], [0], [1], [0, 0, 1, 1], [], []>} : vector<32x32xbf16>, vector<32x128xbf16>, vector<32x128xf32> -> vector<32x128xf32>
      %c0_16 = arith.constant 0 : index
      %c0_17 = arith.constant 0 : index
      %21 = vector.load %arg11[%c0_16, %c0_17] : memref<1x128xf32, #tpu.memory_space<vmem>>, vector<1x128xf32>
      %22 = vector.broadcast %21 : vector<1x128xf32> to vector<32x128xf32>
      %23 = arith.addf %20, %22 : vector<32x128xf32>
      %c0_18 = arith.constant 0 : index
      %c0_19 = arith.constant 0 : index
      %24 = vector.load %arg16[%c0_18, %c0_19] : memref<32x128xf32, #tpu.memory_space<vmem>>, vector<32x128xf32>
      tpu.vector_store %arg16[%c0_18, %c0_19], %23 {strides = array<i32>} : memref<32x128xf32, #tpu.memory_space<vmem>>, vector<32x128xf32>,
      %c0_20 = arith.constant 0 : index
      %c0_21 = arith.constant 0 : index
      %25 = vector.load %arg8[%c0_20, %c0_21] : memref<32x128xbf16, #tpu.memory_space<vmem>>, vector<32x128xbf16>
      %c0_22 = arith.constant 0 : index
      %c0_23 = arith.constant 0 : index
      %26 = vector.load %arg9[%c0_22, %c0_23] : memref<32x128xbf16, #tpu.memory_space<vmem>>, vector<32x128xbf16>
      %c0_24 = arith.constant 0 : index
      %c0_25 = arith.constant 0 : index
      %27 = vector.load %arg2[%c0_24, %c0_25] : memref<8x1xi32, #tpu.memory_space<vmem>>, vector<8x1xi32>
      %c0_26 = arith.constant 0 : index
      %c0_27 = arith.constant 0 : index
      %c0_28 = arith.constant 0 : index
      %28 = vector.load %arg17[%c0_26, %c0_27, %c0_28] : memref<2x8x32xf32, #tpu.memory_space<vmem>>, vector<1x8x32xf32>
      %29 = vector.shape_cast %28 : vector<1x8x32xf32> to vector<8x32xf32>
      %c1 = arith.constant 1 : index
      %c0_29 = arith.constant 0 : index
      %c0_30 = arith.constant 0 : index
      %30 = vector.load %arg17[%c1, %c0_29, %c0_30] : memref<2x8x32xf32, #tpu.memory_space<vmem>>, vector<1x8x32xf32>
      %31 = vector.shape_cast %30 : vector<1x8x32xf32> to vector<8x32xf32>
      %c0_31 = arith.constant 0 : index
      %c0_32 = arith.constant 0 : index
      %c0_33 = arith.constant 0 : index
      %32 = vector.load %arg18[%c0_31, %c0_32, %c0_33] : memref<2x8x32xf32, #tpu.memory_space<vmem>>, vector<1x8x32xf32>
      %33 = vector.shape_cast %32 : vector<1x8x32xf32> to vector<8x32xf32>
      %c1_34 = arith.constant 1 : index
      %c0_35 = arith.constant 0 : index
      %c0_36 = arith.constant 0 : index
      %34 = vector.load %arg18[%c1_34, %c0_35, %c0_36] : memref<2x8x32xf32, #tpu.memory_space<vmem>>, vector<1x8x32xf32>
      %35 = vector.shape_cast %34 : vector<1x8x32xf32> to vector<8x32xf32>
      %c0_37 = arith.constant 0 : index
      %c0_38 = arith.constant 0 : index
      %36 = vector.load %arg15[%c0_37, %c0_38] : memref<32x128xf32, #tpu.memory_space<vmem>>, vector<8x128xf32>
      %37 = arith.truncf %29 : vector<8x32xf32> to vector<8x32xbf16>
      %cst_39 = arith.constant dense<0.000000e+00> : vector<8x128xf32>
      %38 = tpu.matmul %37, %25, %cst_39 {dimension_numbers = #tpu.dot_dimension_numbers<[1], [0], [0], [1], [0, 0, 1, 1], [], []>} : vector<8x32xbf16>, vector<32x128xbf16>, vector<8x128xf32> -> vector<8x128xf32>
      %39 = arith.addf %36, %38 : vector<8x128xf32>
      %c0_40 = arith.constant 0 : index
      %c0_41 = arith.constant 0 : index
      %40 = vector.load %arg16[%c0_40, %c0_41] : memref<32x128xf32, #tpu.memory_space<vmem>>, vector<8x128xf32>
      %41 = arith.truncf %31 : vector<8x32xf32> to vector<8x32xbf16>
      %cst_42 = arith.constant dense<0.000000e+00> : vector<8x128xf32>
      %42 = tpu.matmul %41, %26, %cst_42 {dimension_numbers = #tpu.dot_dimension_numbers<[1], [0], [0], [1], [0, 0, 1, 1], [], []>} : vector<8x32xbf16>, vector<32x128xbf16>, vector<8x128xf32> -> vector<8x128xf32>
      %43 = arith.addf %40, %42 : vector<8x128xf32>
      %44 = vector.extract_strided_slice %39 {offsets = [0, 0], sizes = [8, 32], strides = [1, 1]} : vector<8x128xf32> to vector<8x32xf32>
      %45 = arith.negf %44 : vector<8x32xf32>
      %46 = math.exp %45 : vector<8x32xf32>
      %cst_43 = arith.constant 1.000000e+00 : f32
      %47 = vector.broadcast %cst_43 : f32 to vector<8x32xf32>
      %48 = arith.addf %47, %46 : vector<8x32xf32>
      %49 = arith.divf %47, %48 : vector<8x32xf32>
      %50 = vector.extract_strided_slice %39 {offsets = [0, 32], sizes = [8, 32], strides = [1, 1]} : vector<8x128xf32> to vector<8x32xf32>
      %51 = arith.negf %50 : vector<8x32xf32>
      %52 = math.exp %51 : vector<8x32xf32>
      %cst_44 = arith.constant 1.000000e+00 : f32
      %53 = vector.broadcast %cst_44 : f32 to vector<8x32xf32>
      %54 = arith.addf %53, %52 : vector<8x32xf32>
      %55 = arith.divf %53, %54 : vector<8x32xf32>
      %56 = vector.extract_strided_slice %39 {offsets = [0, 64], sizes = [8, 32], strides = [1, 1]} : vector<8x128xf32> to vector<8x32xf32>
      %57 = math.tanh %56 : vector<8x32xf32>
      %58 = vector.extract_strided_slice %39 {offsets = [0, 96], sizes = [8, 32], strides = [1, 1]} : vector<8x128xf32> to vector<8x32xf32>
      %59 = arith.negf %58 : vector<8x32xf32>
      %60 = math.exp %59 : vector<8x32xf32>
      %cst_45 = arith.constant 1.000000e+00 : f32
      %61 = vector.broadcast %cst_45 : f32 to vector<8x32xf32>
      %62 = arith.addf %61, %60 : vector<8x32xf32>
      %63 = arith.divf %61, %62 : vector<8x32xf32>
      %64 = vector.extract_strided_slice %43 {offsets = [0, 0], sizes = [8, 32], strides = [1, 1]} : vector<8x128xf32> to vector<8x32xf32>
      %65 = arith.negf %64 : vector<8x32xf32>
      %66 = math.exp %65 : vector<8x32xf32>
      %cst_46 = arith.constant 1.000000e+00 : f32
      %67 = vector.broadcast %cst_46 : f32 to vector<8x32xf32>
      %68 = arith.addf %67, %66 : vector<8x32xf32>
      %69 = arith.divf %67, %68 : vector<8x32xf32>
      %70 = vector.extract_strided_slice %43 {offsets = [0, 32], sizes = [8, 32], strides = [1, 1]} : vector<8x128xf32> to vector<8x32xf32>
      %71 = arith.negf %70 : vector<8x32xf32>
      %72 = math.exp %71 : vector<8x32xf32>
      %cst_47 = arith.constant 1.000000e+00 : f32
      %73 = vector.broadcast %cst_47 : f32 to vector<8x32xf32>
      %74 = arith.addf %73, %72 : vector<8x32xf32>
      %75 = arith.divf %73, %74 : vector<8x32xf32>
      %76 = vector.extract_strided_slice %43 {offsets = [0, 64], sizes = [8, 32], strides = [1, 1]} : vector<8x128xf32> to vector<8x32xf32>
      %77 = math.tanh %76 : vector<8x32xf32>
      %78 = vector.extract_strided_slice %43 {offsets = [0, 96], sizes = [8, 32], strides = [1, 1]} : vector<8x128xf32> to vector<8x32xf32>
      %79 = arith.negf %78 : vector<8x32xf32>
      %80 = math.exp %79 : vector<8x32xf32>
      %cst_48 = arith.constant 1.000000e+00 : f32
      %81 = vector.broadcast %cst_48 : f32 to vector<8x32xf32>
      %82 = arith.addf %81, %80 : vector<8x32xf32>
      %83 = arith.divf %81, %82 : vector<8x32xf32>
      %84 = arith.mulf %55, %33 : vector<8x32xf32>
      %85 = arith.mulf %49, %57 : vector<8x32xf32>
      %86 = arith.addf %84, %85 : vector<8x32xf32>
      %87 = arith.mulf %75, %35 : vector<8x32xf32>
      %88 = arith.mulf %69, %77 : vector<8x32xf32>
      %89 = arith.addf %87, %88 : vector<8x32xf32>
      %90 = math.tanh %86 : vector<8x32xf32>
      %91 = arith.mulf %63, %90 : vector<8x32xf32>
      %92 = math.tanh %89 : vector<8x32xf32>
      %93 = arith.mulf %83, %92 : vector<8x32xf32>
      %c0_i32_49 = arith.constant 0 : i32
      %94 = arith.addi %0, %c0_i32_49 : i32
      %95 = vector.broadcast %94 : i32 to vector<8x1xi32>
      %96 = arith.cmpi sgt, %27, %95 : vector<8x1xi32>
      %97 = vector.shape_cast %96 : vector<8x1xi1> to vector<8x1xi1>
      %98 = vector.broadcast %97 : vector<8x1xi1> to vector<8x32xi1>
      %99 = arith.select %98, %91, %29 : vector<8x32xi1>, vector<8x32xf32>
      %100 = vector.shape_cast %96 : vector<8x1xi1> to vector<8x1xi1>
      %101 = vector.broadcast %100 : vector<8x1xi1> to vector<8x32xi1>
      %102 = arith.select %101, %93, %31 : vector<8x32xi1>, vector<8x32xf32>
      %103 = vector.shape_cast %96 : vector<8x1xi1> to vector<8x1xi1>
      %104 = vector.broadcast %103 : vector<8x1xi1> to vector<8x32xi1>
      %105 = arith.select %104, %86, %33 : vector<8x32xi1>, vector<8x32xf32>
      %106 = vector.shape_cast %96 : vector<8x1xi1> to vector<8x1xi1>
      %107 = vector.broadcast %106 : vector<8x1xi1> to vector<8x32xi1>
      %108 = arith.select %107, %89, %35 : vector<8x32xi1>, vector<8x32xf32>
      %c8 = arith.constant 8 : index
      %c0_50 = arith.constant 0 : index
      %109 = vector.load %arg15[%c8, %c0_50] : memref<32x128xf32, #tpu.memory_space<vmem>>, vector<8x128xf32>
      %110 = arith.truncf %99 : vector<8x32xf32> to vector<8x32xbf16>
      %cst_51 = arith.constant dense<0.000000e+00> : vector<8x128xf32>
      %111 = tpu.matmul %110, %25, %cst_51 {dimension_numbers = #tpu.dot_dimension_numbers<[1], [0], [0], [1], [0, 0, 1, 1], [], []>} : vector<8x32xbf16>, vector<32x128xbf16>, vector<8x128xf32> -> vector<8x128xf32>
      %112 = arith.addf %109, %111 : vector<8x128xf32>
      %c8_52 = arith.constant 8 : index
      %c0_53 = arith.constant 0 : index
      %113 = vector.load %arg16[%c8_52, %c0_53] : memref<32x128xf32, #tpu.memory_space<vmem>>, vector<8x128xf32>
      %114 = arith.truncf %102 : vector<8x32xf32> to vector<8x32xbf16>
      %cst_54 = arith.constant dense<0.000000e+00> : vector<8x128xf32>
      %115 = tpu.matmul %114, %26, %cst_54 {dimension_numbers = #tpu.dot_dimension_numbers<[1], [0], [0], [1], [0, 0, 1, 1], [], []>} : vector<8x32xbf16>, vector<32x128xbf16>, vector<8x128xf32> -> vector<8x128xf32>
      %116 = arith.addf %113, %115 : vector<8x128xf32>
      %117 = vector.extract_strided_slice %112 {offsets = [0, 0], sizes = [8, 32], strides = [1, 1]} : vector<8x128xf32> to vector<8x32xf32>
      %118 = arith.negf %117 : vector<8x32xf32>
      %119 = math.exp %118 : vector<8x32xf32>
      %cst_55 = arith.constant 1.000000e+00 : f32
      %120 = vector.broadcast %cst_55 : f32 to vector<8x32xf32>
      %121 = arith.addf %120, %119 : vector<8x32xf32>
      %122 = arith.divf %120, %121 : vector<8x32xf32>
      %123 = vector.extract_strided_slice %112 {offsets = [0, 32], sizes = [8, 32], strides = [1, 1]} : vector<8x128xf32> to vector<8x32xf32>
      %124 = arith.negf %123 : vector<8x32xf32>
      %125 = math.exp %124 : vector<8x32xf32>
      %cst_56 = arith.constant 1.000000e+00 : f32
      %126 = vector.broadcast %cst_56 : f32 to vector<8x32xf32>
      %127 = arith.addf %126, %125 : vector<8x32xf32>
      %128 = arith.divf %126, %127 : vector<8x32xf32>
      %129 = vector.extract_strided_slice %112 {offsets = [0, 64], sizes = [8, 32], strides = [1, 1]} : vector<8x128xf32> to vector<8x32xf32>
      %130 = math.tanh %129 : vector<8x32xf32>
      %131 = vector.extract_strided_slice %112 {offsets = [0, 96], sizes = [8, 32], strides = [1, 1]} : vector<8x128xf32> to vector<8x32xf32>
      %132 = arith.negf %131 : vector<8x32xf32>
      %133 = math.exp %132 : vector<8x32xf32>
      %cst_57 = arith.constant 1.000000e+00 : f32
      %134 = vector.broadcast %cst_57 : f32 to vector<8x32xf32>
      %135 = arith.addf %134, %133 : vector<8x32xf32>
      %136 = arith.divf %134, %135 : vector<8x32xf32>
      %137 = vector.extract_strided_slice %116 {offsets = [0, 0], sizes = [8, 32], strides = [1, 1]} : vector<8x128xf32> to vector<8x32xf32>
      %138 = arith.negf %137 : vector<8x32xf32>
      %139 = math.exp %138 : vector<8x32xf32>
      %cst_58 = arith.constant 1.000000e+00 : f32
      %140 = vector.broadcast %cst_58 : f32 to vector<8x32xf32>
      %141 = arith.addf %140, %139 : vector<8x32xf32>
      %142 = arith.divf %140, %141 : vector<8x32xf32>
      %143 = vector.extract_strided_slice %116 {offsets = [0, 32], sizes = [8, 32], strides = [1, 1]} : vector<8x128xf32> to vector<8x32xf32>
      %144 = arith.negf %143 : vector<8x32xf32>
      %145 = math.exp %144 : vector<8x32xf32>
      %cst_59 = arith.constant 1.000000e+00 : f32
      %146 = vector.broadcast %cst_59 : f32 to vector<8x32xf32>
      %147 = arith.addf %146, %145 : vector<8x32xf32>
      %148 = arith.divf %146, %147 : vector<8x32xf32>
      %149 = vector.extract_strided_slice %116 {offsets = [0, 64], sizes = [8, 32], strides = [1, 1]} : vector<8x128xf32> to vector<8x32xf32>
      %150 = math.tanh %149 : vector<8x32xf32>
      %151 = vector.extract_strided_slice %116 {offsets = [0, 96], sizes = [8, 32], strides = [1, 1]} : vector<8x128xf32> to vector<8x32xf32>
      %152 = arith.negf %151 : vector<8x32xf32>
      %153 = math.exp %152 : vector<8x32xf32>
      %cst_60 = arith.constant 1.000000e+00 : f32
      %154 = vector.broadcast %cst_60 : f32 to vector<8x32xf32>
      %155 = arith.addf %154, %153 : vector<8x32xf32>
      %156 = arith.divf %154, %155 : vector<8x32xf32>
      %157 = arith.mulf %128, %105 : vector<8x32xf32>
      %158 = arith.mulf %122, %130 : vector<8x32xf32>
      %159 = arith.addf %157, %158 : vector<8x32xf32>
      %160 = arith.mulf %148, %108 : vector<8x32xf32>
      %161 = arith.mulf %142, %150 : vector<8x32xf32>
      %162 = arith.addf %160, %161 : vector<8x32xf32>
      %163 = math.tanh %159 : vector<8x32xf32>
      %164 = arith.mulf %136, %163 : vector<8x32xf32>
      %165 = math.tanh %162 : vector<8x32xf32>
      %166 = arith.mulf %156, %165 : vector<8x32xf32>
      %c1_i32_61 = arith.constant 1 : i32
      %167 = arith.addi %0, %c1_i32_61 : i32
      %168 = vector.broadcast %167 : i32 to vector<8x1xi32>
      %169 = arith.cmpi sgt, %27, %168 : vector<8x1xi32>
      %170 = vector.shape_cast %169 : vector<8x1xi1> to vector<8x1xi1>
      %171 = vector.broadcast %170 : vector<8x1xi1> to vector<8x32xi1>
      %172 = arith.select %171, %164, %99 : vector<8x32xi1>, vector<8x32xf32>
      %173 = vector.shape_cast %169 : vector<8x1xi1> to vector<8x1xi1>
      %174 = vector.broadcast %173 : vector<8x1xi1> to vector<8x32xi1>
      %175 = arith.select %174, %166, %102 : vector<8x32xi1>, vector<8x32xf32>
      %176 = vector.shape_cast %169 : vector<8x1xi1> to vector<8x1xi1>
      %177 = vector.broadcast %176 : vector<8x1xi1> to vector<8x32xi1>
      %178 = arith.select %177, %159, %105 : vector<8x32xi1>, vector<8x32xf32>
      %179 = vector.shape_cast %169 : vector<8x1xi1> to vector<8x1xi1>
      %180 = vector.broadcast %179 : vector<8x1xi1> to vector<8x32xi1>
      %181 = arith.select %180, %162, %108 : vector<8x32xi1>, vector<8x32xf32>
      %c16 = arith.constant 16 : index
      %c0_62 = arith.constant 0 : index
      %182 = vector.load %arg15[%c16, %c0_62] : memref<32x128xf32, #tpu.memory_space<vmem>>, vector<8x128xf32>
      %183 = arith.truncf %172 : vector<8x32xf32> to vector<8x32xbf16>
      %cst_63 = arith.constant dense<0.000000e+00> : vector<8x128xf32>
      %184 = tpu.matmul %183, %25, %cst_63 {dimension_numbers = #tpu.dot_dimension_numbers<[1], [0], [0], [1], [0, 0, 1, 1], [], []>} : vector<8x32xbf16>, vector<32x128xbf16>, vector<8x128xf32> -> vector<8x128xf32>
      %185 = arith.addf %182, %184 : vector<8x128xf32>
      %c16_64 = arith.constant 16 : index
      %c0_65 = arith.constant 0 : index
      %186 = vector.load %arg16[%c16_64, %c0_65] : memref<32x128xf32, #tpu.memory_space<vmem>>, vector<8x128xf32>
      %187 = arith.truncf %175 : vector<8x32xf32> to vector<8x32xbf16>
      %cst_66 = arith.constant dense<0.000000e+00> : vector<8x128xf32>
      %188 = tpu.matmul %187, %26, %cst_66 {dimension_numbers = #tpu.dot_dimension_numbers<[1], [0], [0], [1], [0, 0, 1, 1], [], []>} : vector<8x32xbf16>, vector<32x128xbf16>, vector<8x128xf32> -> vector<8x128xf32>
      %189 = arith.addf %186, %188 : vector<8x128xf32>
      %190 = vector.extract_strided_slice %185 {offsets = [0, 0], sizes = [8, 32], strides = [1, 1]} : vector<8x128xf32> to vector<8x32xf32>
      %191 = arith.negf %190 : vector<8x32xf32>
      %192 = math.exp %191 : vector<8x32xf32>
      %cst_67 = arith.constant 1.000000e+00 : f32
      %193 = vector.broadcast %cst_67 : f32 to vector<8x32xf32>
      %194 = arith.addf %193, %192 : vector<8x32xf32>
      %195 = arith.divf %193, %194 : vector<8x32xf32>
      %196 = vector.extract_strided_slice %185 {offsets = [0, 32], sizes = [8, 32], strides = [1, 1]} : vector<8x128xf32> to vector<8x32xf32>
      %197 = arith.negf %196 : vector<8x32xf32>
      %198 = math.exp %197 : vector<8x32xf32>
      %cst_68 = arith.constant 1.000000e+00 : f32
      %199 = vector.broadcast %cst_68 : f32 to vector<8x32xf32>
      %200 = arith.addf %199, %198 : vector<8x32xf32>
      %201 = arith.divf %199, %200 : vector<8x32xf32>
      %202 = vector.extract_strided_slice %185 {offsets = [0, 64], sizes = [8, 32], strides = [1, 1]} : vector<8x128xf32> to vector<8x32xf32>
      %203 = math.tanh %202 : vector<8x32xf32>
      %204 = vector.extract_strided_slice %185 {offsets = [0, 96], sizes = [8, 32], strides = [1, 1]} : vector<8x128xf32> to vector<8x32xf32>
      %205 = arith.negf %204 : vector<8x32xf32>
      %206 = math.exp %205 : vector<8x32xf32>
      %cst_69 = arith.constant 1.000000e+00 : f32
      %207 = vector.broadcast %cst_69 : f32 to vector<8x32xf32>
      %208 = arith.addf %207, %206 : vector<8x32xf32>
      %209 = arith.divf %207, %208 : vector<8x32xf32>
      %210 = vector.extract_strided_slice %189 {offsets = [0, 0], sizes = [8, 32], strides = [1, 1]} : vector<8x128xf32> to vector<8x32xf32>
      %211 = arith.negf %210 : vector<8x32xf32>
      %212 = math.exp %211 : vector<8x32xf32>
      %cst_70 = arith.constant 1.000000e+00 : f32
      %213 = vector.broadcast %cst_70 : f32 to vector<8x32xf32>
      %214 = arith.addf %213, %212 : vector<8x32xf32>
      %215 = arith.divf %213, %214 : vector<8x32xf32>
      %216 = vector.extract_strided_slice %189 {offsets = [0, 32], sizes = [8, 32], strides = [1, 1]} : vector<8x128xf32> to vector<8x32xf32>
      %217 = arith.negf %216 : vector<8x32xf32>
      %218 = math.exp %217 : vector<8x32xf32>
      %cst_71 = arith.constant 1.000000e+00 : f32
      %219 = vector.broadcast %cst_71 : f32 to vector<8x32xf32>
      %220 = arith.addf %219, %218 : vector<8x32xf32>
      %221 = arith.divf %219, %220 : vector<8x32xf32>
      %222 = vector.extract_strided_slice %189 {offsets = [0, 64], sizes = [8, 32], strides = [1, 1]} : vector<8x128xf32> to vector<8x32xf32>
      %223 = math.tanh %222 : vector<8x32xf32>
      %224 = vector.extract_strided_slice %189 {offsets = [0, 96], sizes = [8, 32], strides = [1, 1]} : vector<8x128xf32> to vector<8x32xf32>
      %225 = arith.negf %224 : vector<8x32xf32>
      %226 = math.exp %225 : vector<8x32xf32>
      %cst_72 = arith.constant 1.000000e+00 : f32
      %227 = vector.broadcast %cst_72 : f32 to vector<8x32xf32>
      %228 = arith.addf %227, %226 : vector<8x32xf32>
      %229 = arith.divf %227, %228 : vector<8x32xf32>
      %230 = arith.mulf %201, %178 : vector<8x32xf32>
      %231 = arith.mulf %195, %203 : vector<8x32xf32>
      %232 = arith.addf %230, %231 : vector<8x32xf32>
      %233 = arith.mulf %221, %181 : vector<8x32xf32>
      %234 = arith.mulf %215, %223 : vector<8x32xf32>
      %235 = arith.addf %233, %234 : vector<8x32xf32>
      %236 = math.tanh %232 : vector<8x32xf32>
      %237 = arith.mulf %209, %236 : vector<8x32xf32>
      %238 = math.tanh %235 : vector<8x32xf32>
      %239 = arith.mulf %229, %238 : vector<8x32xf32>
      %c2_i32 = arith.constant 2 : i32
      %240 = arith.addi %0, %c2_i32 : i32
      %241 = vector.broadcast %240 : i32 to vector<8x1xi32>
      %242 = arith.cmpi sgt, %27, %241 : vector<8x1xi32>
      %243 = vector.shape_cast %242 : vector<8x1xi1> to vector<8x1xi1>
      %244 = vector.broadcast %243 : vector<8x1xi1> to vector<8x32xi1>
      %245 = arith.select %244, %237, %172 : vector<8x32xi1>, vector<8x32xf32>
      %246 = vector.shape_cast %242 : vector<8x1xi1> to vector<8x1xi1>
      %247 = vector.broadcast %246 : vector<8x1xi1> to vector<8x32xi1>
      %248 = arith.select %247, %239, %175 : vector<8x32xi1>, vector<8x32xf32>
      %249 = vector.shape_cast %242 : vector<8x1xi1> to vector<8x1xi1>
      %250 = vector.broadcast %249 : vector<8x1xi1> to vector<8x32xi1>
      %251 = arith.select %250, %232, %178 : vector<8x32xi1>, vector<8x32xf32>
      %252 = vector.shape_cast %242 : vector<8x1xi1> to vector<8x1xi1>
      %253 = vector.broadcast %252 : vector<8x1xi1> to vector<8x32xi1>
      %254 = arith.select %253, %235, %181 : vector<8x32xi1>, vector<8x32xf32>
      %c24 = arith.constant 24 : index
      %c0_73 = arith.constant 0 : index
      %255 = vector.load %arg15[%c24, %c0_73] : memref<32x128xf32, #tpu.memory_space<vmem>>, vector<8x128xf32>
      %256 = arith.truncf %245 : vector<8x32xf32> to vector<8x32xbf16>
      %cst_74 = arith.constant dense<0.000000e+00> : vector<8x128xf32>
      %257 = tpu.matmul %256, %25, %cst_74 {dimension_numbers = #tpu.dot_dimension_numbers<[1], [0], [0], [1], [0, 0, 1, 1], [], []>} : vector<8x32xbf16>, vector<32x128xbf16>, vector<8x128xf32> -> vector<8x128xf32>
      %258 = arith.addf %255, %257 : vector<8x128xf32>
      %c24_75 = arith.constant 24 : index
      %c0_76 = arith.constant 0 : index
      %259 = vector.load %arg16[%c24_75, %c0_76] : memref<32x128xf32, #tpu.memory_space<vmem>>, vector<8x128xf32>
      %260 = arith.truncf %248 : vector<8x32xf32> to vector<8x32xbf16>
      %cst_77 = arith.constant dense<0.000000e+00> : vector<8x128xf32>
      %261 = tpu.matmul %260, %26, %cst_77 {dimension_numbers = #tpu.dot_dimension_numbers<[1], [0], [0], [1], [0, 0, 1, 1], [], []>} : vector<8x32xbf16>, vector<32x128xbf16>, vector<8x128xf32> -> vector<8x128xf32>
      %262 = arith.addf %259, %261 : vector<8x128xf32>
      %263 = vector.extract_strided_slice %258 {offsets = [0, 0], sizes = [8, 32], strides = [1, 1]} : vector<8x128xf32> to vector<8x32xf32>
      %264 = arith.negf %263 : vector<8x32xf32>
      %265 = math.exp %264 : vector<8x32xf32>
      %cst_78 = arith.constant 1.000000e+00 : f32
      %266 = vector.broadcast %cst_78 : f32 to vector<8x32xf32>
      %267 = arith.addf %266, %265 : vector<8x32xf32>
      %268 = arith.divf %266, %267 : vector<8x32xf32>
      %269 = vector.extract_strided_slice %258 {offsets = [0, 32], sizes = [8, 32], strides = [1, 1]} : vector<8x128xf32> to vector<8x32xf32>
      %270 = arith.negf %269 : vector<8x32xf32>
      %271 = math.exp %270 : vector<8x32xf32>
      %cst_79 = arith.constant 1.000000e+00 : f32
      %272 = vector.broadcast %cst_79 : f32 to vector<8x32xf32>
      %273 = arith.addf %272, %271 : vector<8x32xf32>
      %274 = arith.divf %272, %273 : vector<8x32xf32>
      %275 = vector.extract_strided_slice %258 {offsets = [0, 64], sizes = [8, 32], strides = [1, 1]} : vector<8x128xf32> to vector<8x32xf32>
      %276 = math.tanh %275 : vector<8x32xf32>
      %277 = vector.extract_strided_slice %258 {offsets = [0, 96], sizes = [8, 32], strides = [1, 1]} : vector<8x128xf32> to vector<8x32xf32>
      %278 = arith.negf %277 : vector<8x32xf32>
      %279 = math.exp %278 : vector<8x32xf32>
      %cst_80 = arith.constant 1.000000e+00 : f32
      %280 = vector.broadcast %cst_80 : f32 to vector<8x32xf32>
      %281 = arith.addf %280, %279 : vector<8x32xf32>
      %282 = arith.divf %280, %281 : vector<8x32xf32>
      %283 = vector.extract_strided_slice %262 {offsets = [0, 0], sizes = [8, 32], strides = [1, 1]} : vector<8x128xf32> to vector<8x32xf32>
      %284 = arith.negf %283 : vector<8x32xf32>
      %285 = math.exp %284 : vector<8x32xf32>
      %cst_81 = arith.constant 1.000000e+00 : f32
      %286 = vector.broadcast %cst_81 : f32 to vector<8x32xf32>
      %287 = arith.addf %286, %285 : vector<8x32xf32>
      %288 = arith.divf %286, %287 : vector<8x32xf32>
      %289 = vector.extract_strided_slice %262 {offsets = [0, 32], sizes = [8, 32], strides = [1, 1]} : vector<8x128xf32> to vector<8x32xf32>
      %290 = arith.negf %289 : vector<8x32xf32>
      %291 = math.exp %290 : vector<8x32xf32>
      %cst_82 = arith.constant 1.000000e+00 : f32
      %292 = vector.broadcast %cst_82 : f32 to vector<8x32xf32>
      %293 = arith.addf %292, %291 : vector<8x32xf32>
      %294 = arith.divf %292, %293 : vector<8x32xf32>
      %295 = vector.extract_strided_slice %262 {offsets = [0, 64], sizes = [8, 32], strides = [1, 1]} : vector<8x128xf32> to vector<8x32xf32>
      %296 = math.tanh %295 : vector<8x32xf32>
      %297 = vector.extract_strided_slice %262 {offsets = [0, 96], sizes = [8, 32], strides = [1, 1]} : vector<8x128xf32> to vector<8x32xf32>
      %298 = arith.negf %297 : vector<8x32xf32>
      %299 = math.exp %298 : vector<8x32xf32>
      %cst_83 = arith.constant 1.000000e+00 : f32
      %300 = vector.broadcast %cst_83 : f32 to vector<8x32xf32>
      %301 = arith.addf %300, %299 : vector<8x32xf32>
      %302 = arith.divf %300, %301 : vector<8x32xf32>
      %303 = arith.mulf %274, %251 : vector<8x32xf32>
      %304 = arith.mulf %268, %276 : vector<8x32xf32>
      %305 = arith.addf %303, %304 : vector<8x32xf32>
      %306 = arith.mulf %294, %254 : vector<8x32xf32>
      %307 = arith.mulf %288, %296 : vector<8x32xf32>
      %308 = arith.addf %306, %307 : vector<8x32xf32>
      %309 = math.tanh %305 : vector<8x32xf32>
      %310 = arith.mulf %282, %309 : vector<8x32xf32>
      %311 = math.tanh %308 : vector<8x32xf32>
      %312 = arith.mulf %302, %311 : vector<8x32xf32>
      %c3_i32 = arith.constant 3 : i32
      %313 = arith.addi %0, %c3_i32 : i32
      %314 = vector.broadcast %313 : i32 to vector<8x1xi32>
      %315 = arith.cmpi sgt, %27, %314 : vector<8x1xi32>
      %316 = vector.shape_cast %315 : vector<8x1xi1> to vector<8x1xi1>
      %317 = vector.broadcast %316 : vector<8x1xi1> to vector<8x32xi1>
      %318 = arith.select %317, %310, %245 : vector<8x32xi1>, vector<8x32xf32>
      %319 = vector.shape_cast %315 : vector<8x1xi1> to vector<8x1xi1>
      %320 = vector.broadcast %319 : vector<8x1xi1> to vector<8x32xi1>
      %321 = arith.select %320, %312, %248 : vector<8x32xi1>, vector<8x32xf32>
      %322 = vector.shape_cast %315 : vector<8x1xi1> to vector<8x1xi1>
      %323 = vector.broadcast %322 : vector<8x1xi1> to vector<8x32xi1>
      %324 = arith.select %323, %305, %251 : vector<8x32xi1>, vector<8x32xf32>
      %325 = vector.shape_cast %315 : vector<8x1xi1> to vector<8x1xi1>
      %326 = vector.broadcast %325 : vector<8x1xi1> to vector<8x32xi1>
      %327 = arith.select %326, %308, %254 : vector<8x32xi1>, vector<8x32xf32>
      %c0_84 = arith.constant 0 : index
      %c0_85 = arith.constant 0 : index
      %c0_86 = arith.constant 0 : index
      %328 = vector.load %arg17[%c0_84, %c0_85, %c0_86] : memref<2x8x32xf32, #tpu.memory_space<vmem>>, vector<1x8x32xf32>
      %329 = vector.shape_cast %328 : vector<1x8x32xf32> to vector<8x32xf32>
      %330 = vector.shape_cast %318 : vector<8x32xf32> to vector<1x8x32xf32>
      tpu.vector_store %arg17[%c0_84, %c0_85, %c0_86], %330 {strides = array<i32>} : memref<2x8x32xf32, #tpu.memory_space<vmem>>, vector<1x8x32xf32>,
      %c1_87 = arith.constant 1 : index
      %c0_88 = arith.constant 0 : index
      %c0_89 = arith.constant 0 : index
      %331 = vector.load %arg17[%c1_87, %c0_88, %c0_89] : memref<2x8x32xf32, #tpu.memory_space<vmem>>, vector<1x8x32xf32>
      %332 = vector.shape_cast %331 : vector<1x8x32xf32> to vector<8x32xf32>
      %333 = vector.shape_cast %321 : vector<8x32xf32> to vector<1x8x32xf32>
      tpu.vector_store %arg17[%c1_87, %c0_88, %c0_89], %333 {strides = array<i32>} : memref<2x8x32xf32, #tpu.memory_space<vmem>>, vector<1x8x32xf32>,
      %c0_90 = arith.constant 0 : index
      %c0_91 = arith.constant 0 : index
      %c0_92 = arith.constant 0 : index
      %334 = vector.load %arg18[%c0_90, %c0_91, %c0_92] : memref<2x8x32xf32, #tpu.memory_space<vmem>>, vector<1x8x32xf32>
      %335 = vector.shape_cast %334 : vector<1x8x32xf32> to vector<8x32xf32>
      %336 = vector.shape_cast %324 : vector<8x32xf32> to vector<1x8x32xf32>
      tpu.vector_store %arg18[%c0_90, %c0_91, %c0_92], %336 {strides = array<i32>} : memref<2x8x32xf32, #tpu.memory_space<vmem>>, vector<1x8x32xf32>,
      %c1_93 = arith.constant 1 : index
      %c0_94 = arith.constant 0 : index
      %c0_95 = arith.constant 0 : index
      %337 = vector.load %arg18[%c1_93, %c0_94, %c0_95] : memref<2x8x32xf32, #tpu.memory_space<vmem>>, vector<1x8x32xf32>
      %338 = vector.shape_cast %337 : vector<1x8x32xf32> to vector<8x32xf32>
      %339 = vector.shape_cast %327 : vector<8x32xf32> to vector<1x8x32xf32>
      tpu.vector_store %arg18[%c1_93, %c0_94, %c0_95], %339 {strides = array<i32>} : memref<2x8x32xf32, #tpu.memory_space<vmem>>, vector<1x8x32xf32>,
    } else {
    }
    %c1_i32 = arith.constant 1 : i32
    %8 = arith.cmpi eq, %arg0, %c1_i32 : i32
    %9 = arith.extui %8 : i1 to i32
    %c0_i32_2 = arith.constant 0 : i32
    %10 = arith.cmpi ne, %9, %c0_i32_2 : i32
    scf.if %10 {
      %c0_3 = arith.constant 0 : index
      %c0_4 = arith.constant 0 : index
      %c0_5 = arith.constant 0 : index
      %11 = vector.load %arg17[%c0_3, %c0_4, %c0_5] : memref<2x8x32xf32, #tpu.memory_space<vmem>>, vector<1x8x32xf32>
      %12 = vector.shape_cast %11 : vector<1x8x32xf32> to vector<8x32xf32>
      %c1 = arith.constant 1 : index
      %c0_6 = arith.constant 0 : index
      %c0_7 = arith.constant 0 : index
      %13 = vector.load %arg17[%c1, %c0_6, %c0_7] : memref<2x8x32xf32, #tpu.memory_space<vmem>>, vector<1x8x32xf32>
      %14 = vector.shape_cast %13 : vector<1x8x32xf32> to vector<8x32xf32>
      %15 = tpu.concatenate %12, %14 in 1 : vector<8x32xf32>, vector<8x32xf32> -> vector<8x64xf32>
      %c0_8 = arith.constant 0 : index
      %c0_9 = arith.constant 0 : index
      %16 = vector.load %arg12[%c0_8, %c0_9] : memref<64x128xf32, #tpu.memory_space<vmem>>, vector<64x128xf32>
      %cst = arith.constant dense<0.000000e+00> : vector<8x128xf32>
      %17 = tpu.matmul %15, %16, %cst {dimension_numbers = #tpu.dot_dimension_numbers<[1], [0], [0], [1], [0, 0, 1, 1], [], []>} : vector<8x64xf32>, vector<64x128xf32>, vector<8x128xf32> -> vector<8x128xf32>
      %c0_10 = arith.constant 0 : index
      %c0_11 = arith.constant 0 : index
      %18 = vector.load %arg13[%c0_10, %c0_11] : memref<1x128xf32, #tpu.memory_space<vmem>>, vector<1x128xf32>
      %19 = vector.broadcast %18 : vector<1x128xf32> to vector<8x128xf32>
      %20 = arith.addf %17, %19 : vector<8x128xf32>
      %cst_12 = arith.constant dense<0xFF800000> : vector<8xf32>
      %21 = vector.multi_reduction <maximumf>, %20, %cst_12 [1] : vector<8x128xf32> to vector<8xf32>
      %22 = vector.shape_cast %21 : vector<8xf32> to vector<8x1xf32>
      %23 = vector.broadcast %22 : vector<8x1xf32> to vector<8x128xf32>
      %24 = arith.subf %20, %23 : vector<8x128xf32>
      %25 = math.exp %24 : vector<8x128xf32>
      %cst_13 = arith.constant dense<0.000000e+00> : vector<8xf32>
      %26 = vector.multi_reduction <add>, %25, %cst_13 [1] : vector<8x128xf32> to vector<8xf32>
      %27 = vector.shape_cast %26 : vector<8xf32> to vector<8x1xf32>
      %28 = math.log %27 : vector<8x1xf32>
      %29 = arith.addf %22, %28 : vector<8x1xf32>
      %30 = tpu.iota {dimensions = array<i32: 1>} : vector<8x128xi32>
      %c0_14 = arith.constant 0 : index
      %c0_15 = arith.constant 0 : index
      %31 = vector.load %arg3[%c0_14, %c0_15] : memref<8x1xi32, #tpu.memory_space<vmem>>, vector<8x1xi32>
      %32 = vector.broadcast %31 : vector<8x1xi32> to vector<8x128xi32>
      %33 = arith.cmpi eq, %30, %32 : vector<8x128xi32>
      %cst_16 = arith.constant 0.000000e+00 : f32
      %34 = vector.broadcast %cst_16 : f32 to vector<8x128xf32>
      %35 = arith.select %33, %20, %34 : vector<8x128xi1>, vector<8x128xf32>
      %cst_17 = arith.constant dense<0.000000e+00> : vector<8xf32>
      %36 = vector.multi_reduction <add>, %35, %cst_17 [1] : vector<8x128xf32> to vector<8xf32>
      %37 = vector.shape_cast %36 : vector<8xf32> to vector<8x1xf32>
      %38 = arith.subf %29, %37 : vector<8x1xf32>
      %39 = vector.shape_cast %38 : vector<8x1xf32> to vector<1x8x1xf32>
      %cst_18 = arith.constant dense<0.000000e+00> : vector<1xf32>
      %40 = vector.multi_reduction <add>, %39, %cst_18 [1, 2] : vector<1x8x1xf32> to vector<1xf32>
      %41 = vector.shape_cast %40 : vector<1xf32> to vector<1x1x1xf32>
      %42 = vector.extract %41[0, 0, 0] : f32 from vector<1x1x1xf32>
      %cst_19 = arith.constant 8.000000e+00 : f32
      %43 = arith.divf %42, %cst_19 : f32
      %c0_20 = arith.constant 0 : index
      %c0_21 = arith.constant 0 : index
      %44 = memref.load %arg14[%c0_20, %c0_21] : memref<1x1xf32, #tpu.memory_space<smem>>
      memref.store %43, %arg14[%c0_20, %c0_21] : memref<1x1xf32, #tpu.memory_space<smem>>
    } else {
    }
    return
  }
  func.func @transform_0(%arg0: i32, %arg1: memref<1xi32, #tpu.memory_space<smem>>) -> (i32, i32) {
    %c0_i32 = arith.constant 0 : i32
    %c0_i32_0 = arith.constant 0 : i32
    %c0_i32_1 = arith.constant 0 : i32
    return %c0_i32, %c0_i32_0 : i32, i32
  }
  func.func @transform_1(%arg0: i32, %arg1: memref<1xi32, #tpu.memory_space<smem>>) -> (i32, i32) {
    %c0_i32 = arith.constant 0 : i32
    %c0_i32_0 = arith.constant 0 : i32
    %c0_i32_1 = arith.constant 0 : i32
    return %c0_i32, %c0_i32_0 : i32, i32
  }
  func.func @transform_2(%arg0: i32, %arg1: memref<1xi32, #tpu.memory_space<smem>>) -> (i32, i32) {
    %c0_i32 = arith.constant 0 : i32
    %c0_i32_0 = arith.constant 0 : i32
    return %arg0, %c0_i32 : i32, i32
  }
  func.func @transform_3(%arg0: i32, %arg1: memref<1xi32, #tpu.memory_space<smem>>) -> (i32, i32) {
    %c0_i32 = arith.constant 0 : i32
    %c0_i32_0 = arith.constant 0 : i32
    return %arg0, %c0_i32 : i32, i32
  }
  func.func @transform_4(%arg0: i32, %arg1: memref<1xi32, #tpu.memory_space<smem>>) -> (i32, i32) {
    %c0_i32 = arith.constant 0 : i32
    %c0_i32_0 = arith.constant 0 : i32
    %c0_i32_1 = arith.constant 0 : i32
    return %c0_i32, %c0_i32_0 : i32, i32
  }
  func.func @transform_5(%arg0: i32, %arg1: memref<1xi32, #tpu.memory_space<smem>>) -> (i32, i32) {
    %c0_i32 = arith.constant 0 : i32
    %c0_i32_0 = arith.constant 0 : i32
    %c0_i32_1 = arith.constant 0 : i32
    return %c0_i32, %c0_i32_0 : i32, i32
  }
  func.func @transform_6(%arg0: i32, %arg1: memref<1xi32, #tpu.memory_space<smem>>) -> (i32, i32) {
    %c0_i32 = arith.constant 0 : i32
    %c0_i32_0 = arith.constant 0 : i32
    %c0_i32_1 = arith.constant 0 : i32
    return %c0_i32, %c0_i32_0 : i32, i32
  }
  func.func @transform_7(%arg0: i32, %arg1: memref<1xi32, #tpu.memory_space<smem>>) -> (i32, i32) {
    %c0_i32 = arith.constant 0 : i32
    %c0_i32_0 = arith.constant 0 : i32
    %c0_i32_1 = arith.constant 0 : i32
    return %c0_i32, %c0_i32_0 : i32, i32
  }
  func.func @transform_8(%arg0: i32, %arg1: memref<1xi32, #tpu.memory_space<smem>>) -> (i32, i32) {
    %c0_i32 = arith.constant 0 : i32
    %c0_i32_0 = arith.constant 0 : i32
    %c0_i32_1 = arith.constant 0 : i32
    return %c0_i32, %c0_i32_0 : i32, i32
  }
  func.func @transform_9(%arg0: i32, %arg1: memref<1xi32, #tpu.memory_space<smem>>) -> (i32, i32) {
    %c0_i32 = arith.constant 0 : i32
    %c0_i32_0 = arith.constant 0 : i32
    %c0_i32_1 = arith.constant 0 : i32
    return %c0_i32, %c0_i32_0 : i32, i32
  }
  func.func @transform_10(%arg0: i32, %arg1: memref<1xi32, #tpu.memory_space<smem>>) -> (i32, i32) {
    %c0_i32 = arith.constant 0 : i32
    %c0_i32_0 = arith.constant 0 : i32
    %c0_i32_1 = arith.constant 0 : i32
    return %c0_i32, %c0_i32_0 : i32, i32
  }
  func.func @transform_11(%arg0: i32, %arg1: memref<1xi32, #tpu.memory_space<smem>>) -> (i32, i32) {
    %c0_i32 = arith.constant 0 : i32
    %c0_i32_0 = arith.constant 0 : i32
    %c0_i32_1 = arith.constant 0 : i32
    return %c0_i32, %c0_i32_0 : i32, i32
  }
  func.func @transform_12(%arg0: i32, %arg1: memref<1xi32, #tpu.memory_space<smem>>) -> (i32, i32) {
    %c0_i32 = arith.constant 0 : i32
    %c0_i32_0 = arith.constant 0 : i32
    %c0_i32_1 = arith.constant 0 : i32
    return %c0_i32, %c0_i32_0 : i32, i32
  }
}

</mosaic_0001>

<bundles_post_ra>
// kernel: lstm_model_forward.1
= control target key start
LH: loop header
LB: loop body
LE: loop exit
PB: predicated region body
PF: predicated region fallthrough
CT: control target
= control target key end

     0   :  { %s2319_s0 = inlined_call_operand.<no memory space> [shape: s32[1], index: 0, kind: input, shape index: {}]   ;;  %s2320_s1 = inlined_call_operand.vmem [shape: s32[8,1], index: 1, kind: input, shape index: {}]   ;;  %s2321_s2 = inlined_call_operand.vmem [shape: s32[8,1], index: 2, kind: input, shape index: {}]   ;;  %s2322_s3 = inlined_call_operand.vmem [shape: bf16[64,32], index: 3, kind: input, shape index: {}]   ;;  %s2323_s4 = inlined_call_operand.vmem [shape: bf16[64,32], index: 4, kind: input, shape index: {}]   ;;  %s2324_s5 = inlined_call_operand.vmem [shape: bf16[32,128], index: 5, kind: input, shape index: {}]   ;;  %s2325_s6 = inlined_call_operand.vmem [shape: bf16[32,128], index: 6, kind: input, shape index: {}]   ;;  %s2326_s7 = inlined_call_operand.vmem [shape: bf16[32,128], index: 7, kind: input, shape index: {}]   ;;  %s2327_s8 = inlined_call_operand.vmem [shape: bf16[32,128], index: 8, kind: input, shape index: {}]   ;;  %s2328_s9 = inlined_call_operand.vmem [shape: f32[1,128], index: 9, kind: input, shape index: {}]   ;;  %s2329_s10 = inlined_call_operand.vmem [shape: f32[1,128], index: 10, kind: input, shape index: {}]   ;;  %s2330_s11 = inlined_call_operand.vmem [shape: f32[64,128], index: 11, kind: input, shape index: {}]   ;;  %s2331_s12 = inlined_call_operand.vmem [shape: f32[1,128], index: 12, kind: input, shape index: {}]   ;;  %s2332_s13 = inlined_call_operand.hbm [shape: f32[1,1], index: 13, kind: output, shape index: {}]  }
   0x1   :  { %18 = sst [smem:[#allocation7]] %s2319_s0 }
   0x2   :  { %19 = vsyncpa [#allocation9], 0  ;;  %s1958_s27 = smov 0  }
   0x3 LB: > { %s1964_s28 = sadd.s32 4294967295, %s1870_s27   ;;  %p1534_p0 = scmp.ge.s32.totalorder %s1870_s27, 1  ;;  %s1870_s27 = sphi %s1958_s27, %s25_s27  }
   0x4   : > { %p372_p1 = scmp.lt.s32.totalorder %s1870_s27, 3 }
   0x6   : > { %p373_p2 = pnand %p1534_p0, %p372_p1 }
   0x7   : > { %s1969_s29 = sshll.u32 (!%p373_p2), %s1964_s28, 2  ;;  %p1540_p4 = scmp.ne.s32.totalorder (!%p373_p2), %s1964_s28, 0 }
   0x8   : > { %376 = sbr.rel (%p373_p2) target bundleno = 3748 (0xea4), region = 68  ;;  %p415_p3 = scmp.lt.s32.totalorder (!%p373_p2), %s1969_s29, 7 }
   0xf   : > { %s416_s0 = scalar_select %p415_p3, %s1969_s29, 7 }
  0x10   : > { %431 = sbr.rel (%p1540_p4) target bundleno = 23 (0x17), region = 72  ;;  %vm432_vm0 = vcmask (!%p1540_p4), 261120   ;;  %v1872_v0 = vmov (!%p1540_p4), 0.0  }
  0x11   : > { %s1536_s30 = sshll.u32 %s416_s0, 2  ;;  %433 = vst.msk [vmem:[#allocation4] sm:$0xff] (!%p1540_p4), %vm432_vm0, %v1872_v0  ;;  %434 = vst.msk [vmem:[#allocation4 + $0x8] sm:$0xff] (!%p1540_p4), %vm432_vm0, %v1872_v0 }
  0x12   : > { %s418_s16 = scalar_lea.vmem %s2322_s3, %s1536_s30  ;;  %s424_s19 = scalar_lea.vmem %s2323_s4, %s1536_s30  ;;  %435 = vst.msk [vmem:[#allocation5] sm:$0xff] (!%p1540_p4), %vm432_vm0, %v1872_v0  ;;  %436 = vst.msk [vmem:[#allocation5 + $0x8] sm:$0xff] (!%p1540_p4), %vm432_vm0, %v1872_v0 }
  0x17 PF: > { %s437_s20 = sld [smem:[#allocation7]] }
  0x1d   : > { %p1541_p5 = scmp.ge.s32.totalorder %s1969_s29, %s437_s20 }
  0x1e   : > { %v1766_v1 = vld [vmem:[%s2324_s5] sm:$0xff] (!%p1541_p5)   ;;  %v1768_v3 = vld [vmem:[%s2324_s5 + $0x8] sm:$0xff] (!%p1541_p5)   ;;  %vm479_vm1 = vcmask (!%p1541_p5), 261120   ;;  %v1873_v9 = vmov (!%p1541_p5), 0.0   ;;  %v647_v16 = vld [vmem:[#allocation5] sm:$0xff] (!%p1541_p5)  ;;  %vm1874_vm2 = vmmov (!%p1541_p5), 0   ;;  %v822_v58 = vstv (!%p1541_p5), %s1969_s29 }
  0x1f   : > { %441 = sbr.rel (%p1541_p5) target bundleno = 2876 (0xb3c), region = 76  ;;  %v1767_v2 = vld [vmem:[%s2325_s6] sm:$0xff] (!%p1541_p5)   ;;  %1624 = vmatprep.subr.bf16.mxu0 (!%p1541_p5), %v1766_v1  ;;  %v1769_v4 = vld [vmem:[%s2325_s6 + $0x8] sm:$0xff] (!%p1541_p5)   ;;  %s1875_s22 = smov (!%p1541_p5), 32   ;;  %v649_v19 = vld [vmem:[#allocation5 + $0x8] sm:$0xff] (!%p1541_p5)  ;;  %v1876_v48 = vmov (!%p1541_p5), 0  }
  0x20   : > { %1632 = vmatprep.subr.bf16.mxu1 (!%p1541_p5), %v1767_v2  ;;  %1625 = vmatpush3.bf16.msra.mxu0 (!%p1541_p5), %v1766_v1  ;;  %v1770_v5 = vld [vmem:[%s418_s16] sm:$0xff] (!%p1541_p5)   ;;  %v1772_v7 = vld [vmem:[%s418_s16 + $0x8] sm:$0xff] (!%p1541_p5)   ;;  %s1877_s0 = smov (!%p1541_p5), 64   ;;  %s1878_s15 = smov (!%p1541_p5), 96  }
  0x21   : > { %1633 = vmatpush3.bf16.msra.mxu1 (!%p1541_p5), %v1767_v2  ;;  %1626 = vmatprep.subr.bf16.mxu0 (!%p1541_p5), %v1768_v3  ;;  %v1771_v6 = vld [vmem:[%s424_s19] sm:$0xff] (!%p1541_p5)   ;;  %v1773_v8 = vld [vmem:[%s424_s19 + $0x8] sm:$0xff] (!%p1541_p5)   ;;  %s987_s17 = sadd.s32 (!%p1541_p5), 1, %s1969_s29  ;;  %s1145_s18 = sadd.s32 (!%p1541_p5), 2, %s1969_s29 }
  0x22   : > { %1634 = vmatprep.subr.bf16.mxu1 (!%p1541_p5), %v1769_v4  ;;  %1628 = vmatprep.mubr.msk.bf16.mxu0 (!%p1541_p5), %vm479_vm1, %v1770_v5  ;;  %v1999_v10 = vld [vmem:[%s2326_s7] sm:$0xff] (!%p1541_p5)   ;;  %v2011_v12 = vld [vmem:[%s2326_s7 + $0x8] sm:$0xff] (!%p1541_p5)   ;;  %s1303_s16 = sadd.s32 (!%p1541_p5), 3, %s1969_s29 }
  0x23   : > { %1636 = vmatprep.mubr.msk.bf16.mxu1 (!%p1541_p5), %vm479_vm1, %v1771_v6  ;;  %v2005_v11 = vld [vmem:[%s2327_s8] sm:$0xff] (!%p1541_p5)   ;;  %v2018_v13 = vld [vmem:[%s2327_s8 + $0x8] sm:$0xff] (!%p1541_p5)   ;;  %781 = vrot.lane.b32.xlu1 (!%p1541_p5), %v647_v16, %s1875_s22 }
  0x24   : > { %1627 = vmatpush3.bf16.msra.mxu0 (!%p1541_p5), %v1768_v3  ;;  %v2022_v14 = vld [vmem:[#allocation4] sm:$0xff] (!%p1541_p5)  ;;  %v2024_v15 = vld [vmem:[#allocation4 + $0x8] sm:$0xff] (!%p1541_p5)  ;;  %1764 = vset.pattern.permute.xlu0 (!%p1541_p5), %v1876_v48 }
  0x25   : > { %1635 = vmatpush3.bf16.msra.mxu1 (!%p1541_p5), %v1769_v4  ;;  %1640 = vmatprep.subr.bf16.mxu0 (!%p1541_p5), %v1873_v9  ;;  %v651_v17 = vpack.c.bf16 (!%p1541_p5), %v2022_v14, %v2022_v14  ;;  %v709_v18 = vpack.c.bf16 (!%p1541_p5), %v2024_v15, %v2024_v15  ;;  %v1542_v20 = vld [vmem:[%s2328_s9] ss:$0 sm:$0xff] (!%p1541_p5) }
  0x26   : > { %1648 = vmatprep.subr.bf16.mxu1 %v1873_v9  ;;  %v1549_v21 = vld [vmem:[%s2329_s10] ss:$0 sm:$0xff]  ;;  %1765 = vset.pattern.permute.xlu1 %v1876_v48 }
  0x27   : > { %1629 = vmatmul.mubr.msk.bf16.vlgmr.msra.gmra.mrb[0].mxu0 %vm479_vm1, %v1772_v7  ;;  %796 = vrot.lane.b32.xlu1 %v649_v19, %s1875_s22  ;;  %v2080_v57 = vld [vmem:[%s2320_s1] sm:$0xff] }
  0x28   : > { %1637 = vmatmul.mubr.msk.bf16.vlgmr.msra.gmra.mrb[0].mxu1 %vm479_vm1, %v1773_v8  ;;  %1641 = vmatpush3.bf16.msra.mxu0 %v1999_v10  ;;  %vm823_vm3 = vcmp.gt.s32.totalorder %v2080_v57, %v822_v58 }
  0x29   : > { %1649 = vmatpush3.bf16.msra.mxu1 %v2005_v11  ;;  %1642 = vmatprep.subr.bf16.mxu0 %v1873_v9  ;;  %v824_v0 = vsel %vm823_vm3, 1, %v1876_v48 }
  0x2a   : > { %1650 = vmatprep.subr.bf16.mxu1 %v1873_v9  ;;  %1644 = vmatprep.mubr.msk.bf16.mxu0 %vm1874_vm2, %v1873_v9 }
  0x2b   : > { %1652 = vmatprep.mubr.msk.bf16.mxu1 %vm1874_vm2, %v1873_v9 }
  0x2c   : > { %1643 = vmatpush3.bf16.msra.mxu0 %v2011_v12 }
  0x2d   : > { %1651 = vmatpush3.bf16.msra.mxu1 %v2018_v13  ;;  %1656 = vmatprep.subr.bf16.mxu0 %v1873_v9 }
  0x2e   : > { %1664 = vmatprep.subr.bf16.mxu1 %v1873_v9 }
  0x2f   : > { %1645 = vmatmul.mubr.msk.bf16.vlgmr.msra.gmra.mrb[4].mxu0 %vm479_vm1, %v651_v17 }
  0x30   : > { %1653 = vmatmul.mubr.msk.bf16.vlgmr.msra.gmra.mrb[4].mxu1 %vm479_vm1, %v709_v18  ;;  %1657 = vmatpush3.bf16.msra.mxu0 %v1999_v10 }
  0x31   : > { %1658 = vmatprep.subr.bf16.mxu0 %v1873_v9  ;;  %1660 = vmatprep.mubr.msk.bf16.mxu0 %vm1874_vm2, %v1873_v9 }
  0x32   : > { %1665 = vmatpush3.bf16.msra.mxu1 %v2005_v11  ;;  %1668 = vmatprep.mubr.msk.bf16.mxu1 %vm1874_vm2, %v1873_v9 }
  0x33   : > { %1666 = vmatprep.subr.bf16.mxu1 %v1873_v9 }
  0x34   : > { %1659 = vmatpush3.bf16.msra.mxu0 %v2011_v12 }
  0x35   : > { %1672 = vmatprep.subr.bf16.mxu0 %v1873_v9 }
  0x36   : > { %1667 = vmatpush3.bf16.msra.mxu1 %v2018_v13 }
  0x37   : > { %1680 = vmatprep.subr.bf16.mxu1 %v1873_v9 }
  0x95   : > { %v2089_v2 = vpop.permute.xlu1 %781 }
  0x99   : > { %v2092_v4 = vpop.permute.xlu1 %796 }
  0xfa   : > { %v1630_v22 = vpop.f32.mrb[0].mxu0 }
  0xfb   : > { %v2061_v23 = vadd.f32 %v1630_v22, %v1542_v20  ;;  %v520_v24 = vpop.f32.mrb[1].mxu0  ;;  %v1638_v25 = vpop.f32.mrb[0].mxu1 }
  0xfc   : > { %v1631_v26 = vpop.f32.mrb[2].mxu0  ;;  %v2063_v27 = vadd.f32 %v1638_v25, %v1549_v21  ;;  %v616_v28 = vpop.f32.mrb[1].mxu1  ;;  %v521_v36 = vadd.f32 %v1542_v20, %v520_v24 }
  0xfd   : > { %v2065_v29 = vadd.f32 %v1631_v26, %v1542_v20  ;;  %v523_v30 = vpop.f32.mrb[3].mxu0  ;;  %v1639_v31 = vpop.f32.mrb[2].mxu1  ;;  %v617_v37 = vadd.f32 %v1549_v21, %v616_v28 }
  0xfe   : > { %v2067_v32 = vadd.f32 %v1542_v20, %v523_v30  ;;  %v2069_v33 = vadd.f32 %v1639_v31, %v1549_v21  ;;  %v619_v34 = vpop.f32.mrb[3].mxu1 }
  0xff   : > { %v2071_v35 = vadd.f32 %v1549_v21, %v619_v34 }
 0x102   : > { %v701_v38 = vpop.f32.mrb[4].mxu0 }
 0x103   : > { %v707_v39 = vadd.f32 %v701_v38, %v521_v36  ;;  %v759_v40 = vpop.f32.mrb[4].mxu1  ;;  %v1646_v41 = vpop.f32.mrb[5].mxu0 }
 0x104   : > { %v765_v42 = vadd.f32 %v759_v40, %v617_v37  ;;  %v704_v43 = vpop.f32.mrb[6].mxu0  ;;  %v1654_v44 = vpop.f32.mrb[5].mxu1 }
 0x105   : > { %1778 = vtanh.f32 %v707_v39  ;;  %v1647_v45 = vpop.f32.mrb[7].mxu0  ;;  %v762_v46 = vpop.f32.mrb[6].mxu1  ;;  %v1562_v51 = vmul.f32 -1.442695, %v707_v39 }
 0x106   : > { %v1655_v47 = vpop.f32.mrb[7].mxu1  ;;  %1780 = vtanh.f32 %v765_v42  ;;  %v1563_v52 = vmul.f32 -1.442695, %v765_v42 }
 0x107   : > { %1782 = vpow2.f32 %v1562_v51 }
 0x108   : > { %1784 = vpow2.f32 %v1563_v52 }
 0x10f   : > { %v1779_v49 = vpop.eup %1778 }
 0x110   : > { %786 = vrot.lane.b32.xlu0 %v1779_v49, %s1877_s0  ;;  %v1781_v50 = vpop.eup %1780 }
 0x111   : > { %v1783_v53 = vpop.eup %1782 }
 0x112   : > { %v769_v54 = vadd.f32 1.0, %v1783_v53  ;;  %v1785_v55 = vpop.eup %1784  ;;  %v988_v53 = vstv %s987_s17 }
 0x113   : > { %v776_v56 = vadd.f32 1.0, %v1785_v55  ;;  %vm989_vm5 = vcmp.gt.s32.totalorder %v2080_v57, %v988_v53 }
 0x114   : > { %801 = vrot.lane.b32.xlu0 %v1781_v50, %s1877_s0  ;;  %1786 = vrcp.f32 %v769_v54  ;;  %v990_v58 = vsel %vm989_vm5, 1, %v1876_v48 }
 0x115   : > { %1788 = vrcp.f32 %v776_v56 }
 0x11e   : > { %v1787_v59 = vpop.eup %1786 }
 0x11f   : > { %v1789_v62 = vpop.eup %1788  ;;  %v784_v3 = vmul.f32 %v1787_v59, %v2089_v2 }
 0x120   : > { %v799_v7 = vmul.f32 %v1789_v62, %v2092_v4 }
 0x182   : > { %v787_v60 = vpop.permute.xlu0 %786 }
 0x183   : > { %v789_v61 = vmul.f32 %v1787_v59, %v787_v60 }
 0x185   : > { %791 = vrot.lane.b32.xlu0 %v789_v61, %s1875_s22 }
 0x186   : > { %v802_v63 = vpop.permute.xlu0 %801 }
 0x187   : > { %v804_v1 = vmul.f32 %v1789_v62, %v802_v63 }
 0x189   : > { %806 = vrot.lane.b32.xlu1 %v804_v1, %s1875_s22  ;;  %826 = vperm.xlu0 %1764, %v824_v0  }
 0x18d   : > { %830 = vrot.lane.b32.xlu0 %v2022_v14, %s1878_s15 }
 0x1f7   : > { %v792_v5 = vpop.permute.xlu0 %791 }
 0x1f8   : > { %v2094_v6 = vadd.f32 %v792_v5, %v784_v3 }
 0x1fa   : > { %1790 = vtanh.f32 %v2094_v6 }
 0x1fb   : > { %v807_v8 = vpop.permute.xlu1 %806 }
 0x1fc   : > { %v2098_v16 = vadd.f32 %v807_v8, %v799_v7 }
 0x1fe   : > { %1792 = vtanh.f32 %v2098_v16 }
 0x204   : > { %v1791_v17 = vpop.eup %1790 }
 0x205   : > { %812 = vrot.lane.b32.xlu1 %v1791_v17, %s1877_s0 }
 0x208   : > { %v1793_v14 = vpop.eup %1792  ;;  %v2105_v18 = vpop.permute.xlu0 %826 }
 0x209   : > { %818 = vrot.lane.b32.xlu1 %v1793_v14, %s1877_s0  ;;  %vm828_vm4 = vcmp.eq.s32.totalorder %v2105_v18, 1 }
 0x20a   : > { %v2159_v3 = vsel %vm828_vm4, %v2098_v16, %v2092_v4 }
 0x20c   : > { %v831_v20 = vpop.permute.xlu0 %830 }
 0x20d   : > { %835 = vrot.lane.b32.xlu1 %v2024_v15, %s1878_s15 }
 0x277   : > { %v813_v19 = vpop.permute.xlu1 %812 }
 0x278   : > { %v815_v21 = vmul.f32 %v1787_v59, %v813_v19 }
 0x27a   : > { %v2110_v22 = vsel %vm828_vm4, %v815_v21, %v831_v20 }
 0x27b   : > { %v842_v24 = vpack.c.bf16 %v2110_v22, %v2110_v22  ;;  %v819_v25 = vpop.permute.xlu1 %818 }
 0x27c   : > { %v821_v26 = vmul.f32 %v1789_v62, %v819_v25  ;;  %v2149_v62 = vsel %vm828_vm4, %v2094_v6, %v2089_v2 }
 0x27d   : > { %844 = vrot.lane.b32.xlu0 %v842_v24, %s1875_s22 }
 0x27f   : > { %v836_v28 = vpop.permute.xlu1 %835 }
 0x280   : > { %v2117_v15 = vsel %vm828_vm4, %v821_v26, %v836_v28 }
 0x281   : > { %v891_v30 = vpack.c.bf16 %v2117_v15, %v2117_v15 }
 0x283   : > { %893 = vrot.lane.b32.xlu1 %v891_v30, %s1875_s22 }
 0x2ef   : > { %v845_v31 = vpop.permute.xlu0 %844 }
 0x2f0   : > { %1661 = vmatmul.mubr.msk.bf16.vlgmr.msra.gmra.mrb[8].mxu0 %vm479_vm1, %v845_v31 }
 0x2f1   : > { %1673 = vmatpush3.bf16.msra.mxu0 %v1999_v10  ;;  %1676 = vmatprep.mubr.msk.bf16.mxu0 %vm1874_vm2, %v1873_v9 }
 0x2f2   : > { %1674 = vmatprep.subr.bf16.mxu0 %v1873_v9 }
 0x2f5   : > { %v894_v34 = vpop.permute.xlu1 %893  ;;  %1675 = vmatpush3.bf16.msra.mxu0 %v2011_v12 }
 0x2f6   : > { %1669 = vmatmul.mubr.msk.bf16.vlgmr.msra.gmra.mrb[8].mxu1 %vm479_vm1, %v894_v34  ;;  %1688 = vmatprep.subr.bf16.mxu0 %v1873_v9 }
 0x2f7   : > { %1681 = vmatpush3.bf16.msra.mxu1 %v2005_v11  ;;  %1684 = vmatprep.mubr.msk.bf16.mxu1 %vm1874_vm2, %v1873_v9 }
 0x2f8   : > { %1682 = vmatprep.subr.bf16.mxu1 %v1873_v9 }
 0x2fb   : > { %1683 = vmatpush3.bf16.msra.mxu1 %v2018_v13 }
 0x2fc   : > { %1696 = vmatprep.subr.bf16.mxu1 %v1873_v9 }
 0x3c3   : > { %v883_v36 = vpop.f32.mrb[8].mxu0 }
 0x3c4   : > { %v889_v37 = vadd.f32 %v883_v36, %v2067_v32  ;;  %v1662_v38 = vpop.f32.mrb[9].mxu0 }
 0x3c5   : > { %v886_v39 = vpop.f32.mrb[10].mxu0 }
 0x3c6   : > { %1794 = vtanh.f32 %v889_v37  ;;  %v1663_v40 = vpop.f32.mrb[11].mxu0  ;;  %v1566_v49 = vmul.f32 -1.442695, %v889_v37 }
 0x3c9   : > { %v932_v41 = vpop.f32.mrb[8].mxu1 }
 0x3ca   : > { %v938_v42 = vadd.f32 %v932_v41, %v2071_v35  ;;  %v1670_v43 = vpop.f32.mrb[9].mxu1  ;;  %v1146_v41 = vstv %s1145_s18 }
 0x3cb   : > { %v935_v44 = vpop.f32.mrb[10].mxu1  ;;  %vm1147_vm7 = vcmp.gt.s32.totalorder %v2080_v57, %v1146_v41 }
 0x3cc   : > { %1796 = vtanh.f32 %v938_v42  ;;  %v1671_v45 = vpop.f32.mrb[11].mxu1  ;;  %v1567_v32 = vmul.f32 -1.442695, %v938_v42 }
 0x3cd   : > { %1798 = vpow2.f32 %v1566_v49  ;;  %v1148_v45 = vsel %vm1147_vm7, 1, %v1876_v48 }
 0x3ce   : > { %1800 = vpow2.f32 %v1567_v32 }
 0x3d0   : > { %v1795_v46 = vpop.eup %1794 }
 0x3d1   : > { %955 = vrot.lane.b32.xlu0 %v1795_v46, %s1877_s0 }
 0x3d6   : > { %v1797_v47 = vpop.eup %1796 }
 0x3d7   : > { %966 = vrot.lane.b32.xlu1 %v1797_v47, %s1877_s0  ;;  %v1799_v50 = vpop.eup %1798 }
 0x3d8   : > { %v942_v51 = vadd.f32 1.0, %v1799_v50  ;;  %v1801_v52 = vpop.eup %1800 }
 0x3d9   : > { %v949_v35 = vadd.f32 1.0, %v1801_v52 }
 0x3da   : > { %1802 = vrcp.f32 %v942_v51 }
 0x3db   : > { %1804 = vrcp.f32 %v949_v35 }
 0x3e4   : > { %v1803_v54 = vpop.eup %1802 }
 0x3e5   : > { %v1805_v59 = vpop.eup %1804  ;;  %v953_v63 = vmul.f32 %v1803_v54, %v2149_v62 }
 0x3e6   : > { %v964_v5 = vmul.f32 %v1805_v59, %v2159_v3 }
 0x443   : > { %v956_v55 = vpop.permute.xlu0 %955 }
 0x444   : > { %v958_v56 = vmul.f32 %v1803_v54, %v956_v55 }
 0x446   : > { %960 = vrot.lane.b32.xlu0 %v958_v56, %s1875_s22 }
 0x449   : > { %v967_v60 = vpop.permute.xlu1 %966 }
 0x44a   : > { %v969_v61 = vmul.f32 %v1805_v59, %v967_v60  ;;  %992 = vperm.xlu0 %1764, %v990_v58  }
 0x44c   : > { %971 = vrot.lane.b32.xlu1 %v969_v61, %s1875_s22 }
 0x4b8   : > { %v961_v0 = vpop.permute.xlu0 %960 }
 0x4b9   : > { %v2152_v1 = vadd.f32 %v961_v0, %v953_v63 }
 0x4bb   : > { %1806 = vtanh.f32 %v2152_v1 }
 0x4be   : > { %v972_v7 = vpop.permute.xlu1 %971 }
 0x4bf   : > { %v2162_v8 = vadd.f32 %v972_v7, %v964_v5 }
 0x4c1   : > { %1808 = vtanh.f32 %v2162_v8 }
 0x4c5   : > { %v1807_v2 = vpop.eup %1806 }
 0x4c6   : > { %977 = vrot.lane.b32.xlu1 %v1807_v2, %s1877_s0 }
 0x4c9   : > { %v2167_v17 = vpop.permute.xlu0 %992 }
 0x4ca   : > { %vm994_vm6 = vcmp.eq.s32.totalorder %v2167_v17, 1 }
 0x4cb   : > { %v1809_v6 = vpop.eup %1808  ;;  %v2211_v32 = vsel %vm994_vm6, %v2152_v1, %v2149_v62  ;;  %v2221_v35 = vsel %vm994_vm6, %v2162_v8, %v2159_v3 }
 0x4cc   : > { %983 = vrot.lane.b32.xlu0 %v1809_v6, %s1877_s0 }
 0x538   : > { %v978_v14 = vpop.permute.xlu1 %977 }
 0x539   : > { %v980_v19 = vmul.f32 %v1803_v54, %v978_v14 }
 0x53b   : > { %v2173_v4 = vsel %vm994_vm6, %v980_v19, %v2110_v22 }
 0x53c   : > { %v1000_v16 = vpack.c.bf16 %v2173_v4, %v2173_v4 }
 0x53e   : > { %1002 = vrot.lane.b32.xlu1 %v1000_v16, %s1875_s22  ;;  %v984_v18 = vpop.permute.xlu0 %983 }
 0x53f   : > { %v986_v20 = vmul.f32 %v1805_v59, %v984_v18 }
 0x541   : > { %v2181_v21 = vsel %vm994_vm6, %v986_v20, %v2117_v15 }
 0x542   : > { %v1049_v24 = vpack.c.bf16 %v2181_v21, %v2181_v21 }
 0x544   : > { %1051 = vrot.lane.b32.xlu0 %v1049_v24, %s1875_s22 }
 0x5b0   : > { %v1003_v25 = vpop.permute.xlu1 %1002 }
 0x5b1   : > { %1677 = vmatmul.mubr.msk.bf16.vlgmr.msra.gmra.mrb[12].mxu0 %vm479_vm1, %v1003_v25 }
 0x5b2   : > { %1689 = vmatpush3.bf16.msra.mxu0 %v1999_v10  ;;  %1692 = vmatprep.mubr.msk.bf16.mxu0 %vm1874_vm2, %v1873_v9 }
 0x5b3   : > { %1690 = vmatprep.subr.bf16.mxu0 %v1873_v9 }
 0x5b6   : > { %v1052_v22 = vpop.permute.xlu0 %1051  ;;  %1691 = vmatpush3.bf16.msra.mxu0 %v2011_v12 }
 0x5b7   : > { %1685 = vmatmul.mubr.msk.bf16.vlgmr.msra.gmra.mrb[12].mxu1 %vm479_vm1, %v1052_v22 }
 0x5b8   : > { %1697 = vmatpush3.bf16.msra.mxu1 %v2005_v11  ;;  %1700 = vmatprep.mubr.msk.bf16.mxu1 %vm1874_vm2, %v1873_v9 }
 0x5b9   : > { %1698 = vmatprep.subr.bf16.mxu1 %v1873_v9 }
 0x5bc   : > { %1699 = vmatpush3.bf16.msra.mxu1 %v2018_v13 }
 0x684   : > { %v1041_v10 = vpop.f32.mrb[12].mxu0 }
 0x685   : > { %v1047_v26 = vadd.f32 %v1041_v10, %v2061_v23  ;;  %v1678_v28 = vpop.f32.mrb[13].mxu0 }
 0x686   : > { %v1044_v15 = vpop.f32.mrb[14].mxu0 }
 0x687   : > { %1810 = vtanh.f32 %v1047_v26  ;;  %v1679_v30 = vpop.f32.mrb[15].mxu0  ;;  %v1570_v13 = vmul.f32 -1.442695, %v1047_v26  ;;  %v1304_v15 = vstv %s1303_s16 }
 0x688   : > { %vm1305_vm9 = vcmp.gt.s32.totalorder %v2080_v57, %v1304_v15 }
 0x68a   : > { %v1090_v31 = vpop.f32.mrb[12].mxu1 }
 0x68b   : > { %v1096_v12 = vadd.f32 %v1090_v31, %v2063_v27  ;;  %v1686_v34 = vpop.f32.mrb[13].mxu1 }
 0x68c   : > { %v1093_v36 = vpop.f32.mrb[14].mxu1  ;;  %v1306_v34 = vsel %vm1305_vm9, 1, %v1876_v48 }
 0x68d   : > { %1812 = vtanh.f32 %v1096_v12  ;;  %v1687_v11 = vpop.f32.mrb[15].mxu1  ;;  %v1571_v23 = vmul.f32 -1.442695, %v1096_v12 }
 0x68e   : > { %1814 = vpow2.f32 %v1570_v13 }
 0x68f   : > { %1816 = vpow2.f32 %v1571_v23 }
 0x691   : > { %v1811_v37 = vpop.eup %1810 }
 0x692   : > { %1113 = vrot.lane.b32.xlu1 %v1811_v37, %s1877_s0 }
 0x697   : > { %v1813_v9 = vpop.eup %1812 }
 0x698   : > { %1124 = vrot.lane.b32.xlu0 %v1813_v9, %s1877_s0  ;;  %v1815_v38 = vpop.eup %1814 }
 0x699   : > { %v1100_v39 = vadd.f32 1.0, %v1815_v38  ;;  %v1817_v40 = vpop.eup %1816 }
 0x69a   : > { %v1107_v27 = vadd.f32 1.0, %v1817_v40 }
 0x69b   : > { %1818 = vrcp.f32 %v1100_v39 }
 0x69c   : > { %1820 = vrcp.f32 %v1107_v27 }
 0x6a5   : > { %v1819_v42 = vpop.eup %1818 }
 0x6a6   : > { %v1821_v46 = vpop.eup %1820  ;;  %v1111_v50 = vmul.f32 %v1819_v42, %v2211_v32 }
 0x6a7   : > { %v1122_v53 = vmul.f32 %v1821_v46, %v2221_v35 }
 0x704   : > { %v1114_v43 = vpop.permute.xlu1 %1113 }
 0x705   : > { %v1116_v44 = vmul.f32 %v1819_v42, %v1114_v43 }
 0x707   : > { %1118 = vrot.lane.b32.xlu1 %v1116_v44, %s1875_s22 }
 0x70a   : > { %v1125_v47 = vpop.permute.xlu0 %1124 }
 0x70b   : > { %v1127_v49 = vmul.f32 %v1821_v46, %v1125_v47  ;;  %1150 = vperm.xlu1 %1765, %v1148_v45  }
 0x70d   : > { %1129 = vrot.lane.b32.xlu0 %v1127_v49, %s1875_s22 }
 0x779   : > { %v1119_v51 = vpop.permute.xlu1 %1118 }
 0x77a   : > { %v2214_v52 = vadd.f32 %v1119_v51, %v1111_v50 }
 0x77c   : > { %1822 = vtanh.f32 %v2214_v52 }
 0x77f   : > { %v1130_v54 = vpop.permute.xlu0 %1129 }
 0x780   : > { %v2224_v55 = vadd.f32 %v1130_v54, %v1122_v53 }
 0x782   : > { %1824 = vtanh.f32 %v2224_v55 }
 0x786   : > { %v1823_v56 = vpop.eup %1822 }
 0x787   : > { %1135 = vrot.lane.b32.xlu0 %v1823_v56, %s1877_s0 }
 0x78a   : > { %v1151_v59 = vpop.permute.xlu1 %1150 }
 0x78b   : > { %vm1152_vm8 = vcmp.eq.s32.totalorder %v1151_v59, 1 }
 0x78c   : > { %v1825_v58 = vpop.eup %1824  ;;  %v1155_v9 = vsel %vm1152_vm8, %v2214_v52, %v2211_v32  ;;  %v1156_v57 = vsel %vm1152_vm8, %v2224_v55, %v2221_v35 }
 0x78d   : > { %1141 = vrot.lane.b32.xlu1 %v1825_v58, %s1877_s0 }
 0x7f9   : > { %v1136_v60 = vpop.permute.xlu0 %1135 }
 0x7fa   : > { %v1138_v61 = vmul.f32 %v1819_v42, %v1136_v60 }
 0x7fc   : > { %v2231_v62 = vsel %vm1152_vm8, %v1138_v61, %v2173_v4 }
 0x7fd   : > { %v1158_v63 = vpack.c.bf16 %v2231_v62, %v2231_v62 }
 0x7ff   : > { %1160 = vrot.lane.b32.xlu0 %v1158_v63, %s1875_s22  ;;  %v1142_v0 = vpop.permute.xlu1 %1141 }
 0x800   : > { %v1144_v1 = vmul.f32 %v1821_v46, %v1142_v0 }
 0x802   : > { %v2238_v3 = vsel %vm1152_vm8, %v1144_v1, %v2181_v21 }
 0x803   : > { %v1207_v5 = vpack.c.bf16 %v2238_v3, %v2238_v3 }
 0x805   : > { %1209 = vrot.lane.b32.xlu1 %v1207_v5, %s1875_s22 }
 0x871   : > { %v1161_v7 = vpop.permute.xlu0 %1160 }
 0x872   : > { %1693 = vmatmul.mubr.msk.bf16.vlgmr.msra.gmra.mrb[16].mxu0 %vm479_vm1, %v1161_v7 }
 0x877   : > { %v1210_v8 = vpop.permute.xlu1 %1209 }
 0x878   : > { %1701 = vmatmul.mubr.msk.bf16.vlgmr.msra.gmra.mrb[16].mxu1 %vm479_vm1, %v1210_v8 }
 0x945   : > { %v1199_v2 = vpop.f32.mrb[16].mxu0 }
 0x946   : > { %v1205_v6 = vadd.f32 %v1199_v2, %v2065_v29  ;;  %v1694_v17 = vpop.f32.mrb[17].mxu0 }
 0x947   : > { %v1202_v14 = vpop.f32.mrb[18].mxu0 }
 0x948   : > { %1826 = vtanh.f32 %v1205_v6  ;;  %v1695_v19 = vpop.f32.mrb[19].mxu0  ;;  %v1574_v22 = vmul.f32 -1.442695, %v1205_v6 }
 0x94b   : > { %v1248_v4 = vpop.f32.mrb[16].mxu1 }
 0x94c   : > { %v1254_v16 = vadd.f32 %v1248_v4, %v2069_v33  ;;  %v1702_v18 = vpop.f32.mrb[17].mxu1 }
 0x94d   : > { %v1251_v20 = vpop.f32.mrb[18].mxu1 }
 0x94e   : > { %1828 = vtanh.f32 %v1254_v16  ;;  %v1703_v21 = vpop.f32.mrb[19].mxu1  ;;  %v1575_v29 = vmul.f32 -1.442695, %v1254_v16 }
 0x94f   : > { %1830 = vpow2.f32 %v1574_v22 }
 0x950   : > { %1832 = vpow2.f32 %v1575_v29 }
 0x952   : > { %v1827_v24 = vpop.eup %1826 }
 0x953   : > { %1271 = vrot.lane.b32.xlu0 %v1827_v24, %s1877_s0 }
 0x958   : > { %v1829_v25 = vpop.eup %1828 }
 0x959   : > { %1282 = vrot.lane.b32.xlu1 %v1829_v25, %s1877_s0  ;;  %v1831_v10 = vpop.eup %1830 }
 0x95a   : > { %v1258_v26 = vadd.f32 1.0, %v1831_v10  ;;  %v1833_v28 = vpop.eup %1832 }
 0x95b   : > { %v1265_v33 = vadd.f32 1.0, %v1833_v28 }
 0x95c   : > { %1834 = vrcp.f32 %v1258_v26 }
 0x95d   : > { %1836 = vrcp.f32 %v1265_v33 }
 0x966   : > { %v1835_v30 = vpop.eup %1834 }
 0x967   : > { %v1837_v36 = vpop.eup %1836  ;;  %v1269_v13 = vmul.f32 %v1835_v30, %v1155_v9 }
 0x968   : > { %v1280_v39 = vmul.f32 %v1837_v36, %v1156_v57 }
 0x9c5   : > { %v1272_v31 = vpop.permute.xlu0 %1271 }
 0x9c6   : > { %v1274_v12 = vmul.f32 %v1835_v30, %v1272_v31 }
 0x9c8   : > { %1276 = vrot.lane.b32.xlu0 %v1274_v12, %s1875_s22 }
 0x9cb   : > { %v1283_v11 = vpop.permute.xlu1 %1282 }
 0x9cc   : > { %v1285_v37 = vmul.f32 %v1837_v36, %v1283_v11  ;;  %1308 = vperm.xlu0 %1764, %v1306_v34  }
 0x9ce   : > { %1287 = vrot.lane.b32.xlu1 %v1285_v37, %s1875_s22 }
 0xa3a   : > { %v1277_v23 = vpop.permute.xlu0 %1276 }
 0xa3b   : > { %v1279_v38 = vadd.f32 %v1277_v23, %v1269_v13 }
 0xa3d   : > { %1838 = vtanh.f32 %v1279_v38 }
 0xa40   : > { %v1288_v48 = vpop.permute.xlu1 %1287 }
 0xa41   : > { %v1290_v40 = vadd.f32 %v1288_v48, %v1280_v39 }
 0xa43   : > { %1840 = vtanh.f32 %v1290_v40 }
 0xa47   : > { %v1839_v27 = vpop.eup %1838 }
 0xa48   : > { %1293 = vrot.lane.b32.xlu1 %v1839_v27, %s1877_s0 }
 0xa4b   : > { %v1309_v42 = vpop.permute.xlu0 %1308 }
 0xa4c   : > { %vm1310_vm10 = vcmp.eq.s32.totalorder %v1309_v42, 1 }
 0xa4d   : > { %v1841_v41 = vpop.eup %1840  ;;  %v1313_v49 = vsel %vm1310_vm10, %v1279_v38, %v1155_v9  ;;  %v1314_v50 = vsel %vm1310_vm10, %v1290_v40, %v1156_v57 }
 0xa4e   : > { %1299 = vrot.lane.b32.xlu0 %v1841_v41, %s1877_s0 }
 0xaba   : > { %v1294_v43 = vpop.permute.xlu1 %1293 }
 0xabb   : > { %v1296_v44 = vmul.f32 %v1835_v30, %v1294_v43 }
 0xabd   : > { %v1311_v45 = vsel %vm1310_vm10, %v1296_v44, %v2231_v62 }
 0xabe   : > { %1316 = vrot.lane.b32.xlu1 %v1311_v45, %s1875_s22 }
 0xac0   : > { %v1300_v46 = vpop.permute.xlu0 %1299 }
 0xac1   : > { %v1302_v47 = vmul.f32 %v1837_v36, %v1300_v46 }
 0xac2   : > { %1326 = vrot.lane.b32.xlu1 %v1313_v49, %s1878_s15 }
 0xac3   : > { %v1312_v32 = vsel %vm1310_vm10, %v1302_v47, %v2238_v3 }
 0xac4   : > { %1321 = vrot.lane.b32.xlu0 %v1312_v32, %s1875_s22 }
 0xac8   : > { %1331 = vrot.lane.b32.xlu0 %v1314_v50, %s1878_s15 }
 0xb30   : > { %v1317_v51 = vpop.permute.xlu1 %1316 }
 0xb31   : > { %1319 = vst.msk [vmem:[#allocation4] sm:$0xff] %vm479_vm1, %v1317_v51 }
 0xb34   : > { %v1327_v52 = vpop.permute.xlu1 %1326 }
 0xb35   : > { %1329 = vst.msk [vmem:[#allocation5] sm:$0xff] %vm479_vm1, %v1327_v52 }
 0xb36   : > { %v1322_v35 = vpop.permute.xlu0 %1321 }
 0xb37   : > { %1324 = vst.msk [vmem:[#allocation4 + $0x8] sm:$0xff] %vm479_vm1, %v1322_v35 }
 0xb3a   : > { %v1332_v53 = vpop.permute.xlu0 %1331 }
 0xb3b   : > { %1334 = vst.msk [vmem:[#allocation5 + $0x8] sm:$0xff] %vm479_vm1, %v1332_v53 }
 0xb3c PF: > { %p1576_p6 = scmp.ne.s32.totalorder %s1964_s28, 1 }
 0xb3d   : > { %v1348_v55 = vld [vmem:[%s2330_s11] sm:$0xff] (!%p1576_p6)  ;;  %v1349_v56 = vld [vmem:[%s2330_s11 + $0x8] sm:$0xff] (!%p1576_p6)  ;;  %s1879_s22 = smov (!%p1576_p6), 32   ;;  %v1880_v58 = vmov (!%p1576_p6), 0.0|0.0   ;;  %v1350_v60 = vld [vmem:[%s2330_s11 + $0x10] sm:$0xff] (!%p1576_p6)  ;;  %vm1881_vm11 = vmmov (!%p1576_p6), 0   ;;  %v1447_v4 = vlaneseq (!%p1576_p6) }
 0xb3e   : > { %1338 = sbr.rel (%p1576_p6) target bundleno = 3733 (0xe95), region = 80  ;;  %v1341_v54 = vld [vmem:[#allocation4 + $0x8] sm:$0xff] (!%p1576_p6)  ;;  %1723 = vmatprep.subr.bf16.mxu0 (!%p1576_p6), %v1880_v58  ;;  %v1724_v59 = vpack.c.bf16 (!%p1576_p6), %v1349_v56, %v1348_v55  ;;  %v1351_v61 = vld [vmem:[%s2330_s11 + $0x18] sm:$0xff] (!%p1576_p6)  ;;  %v1882_v62 = vmov (!%p1576_p6), 0.0   ;;  %v1883_v0 = vmov (!%p1576_p6), 0   ;;  %v1449_v1 = vld [vmem:[%s2321_s2] sm:$0xff] (!%p1576_p6) }
 0xb3f   : > { %1343 = vrot.lane.b32.xlu0 (!%p1576_p6), %v1341_v54, %s1879_s22  ;;  %1720 = vmatprep.mubr.msk.f32.mxu0 (!%p1576_p6), %vm1881_vm11, %v1882_v62  ;;  %v1727_v63 = vpack.c.bf16 (!%p1576_p6), %v1351_v61, %v1350_v60  ;;  %v1352_v3 = vld [vmem:[%s2330_s11 + $0x20] sm:$0xff] (!%p1576_p6)  ;;  %v1353_v5 = vld [vmem:[%s2330_s11 + $0x28] sm:$0xff] (!%p1576_p6)  ;;  %v1354_v8 = vld [vmem:[%s2330_s11 + $0x30] sm:$0xff] (!%p1576_p6)  ;;  %vm1346_vm12 = vcmask (!%p1576_p6), 261120   ;;  %vm1363_vm13 = vcmask (!%p1576_p6), 523264   ;;  %v1448_v18 = vand.u32 (!%p1576_p6), 127, %v1447_v4 }
 0xb40   : > { %1725 = vmatpush3.bf16.msra.mxu0 (!%p1576_p6), %v1724_v59  ;;  %1842 = vset.pattern.permute.xlu1 (!%p1576_p6), %v1883_v0  ;;  %v1730_v7 = vpack.c.bf16 (!%p1576_p6), %v1353_v5, %v1352_v3  ;;  %v1355_v2 = vld [vmem:[%s2330_s11 + $0x38] sm:$0xff] (!%p1576_p6)  ;;  %v1339_v17 = vld [vmem:[#allocation4] sm:$0xff] (!%p1576_p6)  ;;  %vm1458_vm15 = vcmask (!%p1576_p6), 7168  }
 0xb41   : > { %1726 = vmatprep.subr.bf16.mxu0 (!%p1576_p6), %v1880_v58  ;;  %1451 = vperm.xlu1 (!%p1576_p6), %1842, %v1449_v1   ;;  %v1733_v6 = vpack.c.bf16 (!%p1576_p6), %v1355_v2, %v1354_v8  ;;  %v1577_v16 = vld [vmem:[%s2331_s12] ss:$0 sm:$0xff] (!%p1576_p6) }
 0xb42   : > { %1843 = vset.pattern.permute.xlu0 (!%p1576_p6), %v1883_v0 }
 0xb44   : > { %1728 = vmatpush3.bf16.msra.mxu0 (!%p1576_p6), %v1727_v63 }
 0xb45   : > { %1729 = vmatprep.subr.bf16.mxu0 %v1880_v58 }
 0xb48   : > { %1731 = vmatpush3.bf16.msra.mxu0 %v1730_v7 }
 0xb49   : > { %1732 = vmatprep.subr.bf16.mxu0 %v1880_v58 }
 0xb4c   : > { %1734 = vmatpush3.bf16.msra.mxu0 %v1733_v6 }
 0xbb1   : > { %v1344_v14 = vpop.permute.xlu0 %1343 }
 0xbb2   : > { %v1347_v19 = vsel %vm1346_vm12, %v1339_v17, %v1344_v14 }
 0xbb3   : > { %1721 = vmatmul.mubr.msk.f32.vlgmr.msra.gmra.mrb[0].mxu0 %vm1363_vm13, %v1347_v19 }
 0xbc0   : > { %v1452_v21 = vpop.permute.xlu1 %1451 }
 0xbc1   : > { %vm1453_vm14 = vcmp.eq.s32.totalorder %v1448_v18, %v1452_v21 }
 0xc86   : > { %v1433_v20 = vpop.f32.mrb[0].mxu0 }
 0xc87   : > { %v1434_v24 = vadd.f32 %v1577_v16, %v1433_v20  ;;  %v1722_v25 = vpop.f32.mrb[1].mxu0 }
 0xc89   : > { %1437 = vmax.xlane.f32.xlu0 %v1434_v24  ;;  %v1454_v22 = vsel %vm1453_vm14, %v1434_v24, 0.0 }
 0xc8d   : > { %1455 = vadd.xlane.f32.xlu0 %v1454_v22 }
 0xd16   : > { %v1438_v29 = vpop.xlane.xlu0 %1437 }
 0xd17   : > { %v1439_v10 = vsub.f32 %v1434_v24, %v1438_v29 }
 0xd19   : > { %v1440_v26 = vmul.f32 1.442695, %v1439_v10 }
 0xd1a   : > { %v1456_v12 = vpop.xlane.xlu0 %1455 }
 0xd1b   : > { %1844 = vpow2.f32 %v1440_v26 }
 0xd25   : > { %v1845_v28 = vpop.eup %1844 }
 0xd26   : > { %1442 = vadd.xlane.f32.xlu1 %v1845_v28 }
 0xdb3   : > { %v1443_v33 = vpop.xlane.xlu1 %1442 }
 0xdb4   : > { %1846 = vlog2.f32 %v1443_v33 }
 0xdbe   : > { %v1847_v15 = vpop.eup %1846 }
 0xdbf   : > { %v1445_v30 = vmul.f32 0.6931472, %v1847_v15 }
 0xdc1   : > { %v1446_v31 = vadd.f32 %v1445_v30, %v1438_v29 }
 0xdc3   : > { %v1457_v34 = vsub.f32 %v1446_v31, %v1456_v12 }
 0xdc5   : > { %v1459_v36 = vsel %vm1458_vm15, %v1457_v34, 0.0 }
 0xdc6   : > { %1460 = vadd.xlane.f32.xlu0 %v1459_v36 }
 0xe53   : > { %v1461_v11 = vpop.xlane.xlu0 %1460 }
 0xe54   : > { %v1462_v37 = vrot.slane %v1461_v11, 4 }
 0xe56   : > { %v1463_v9 = vadd.f32 %v1462_v37, %v1461_v11 }
 0xe58   : > { %v1464_v13 = vrot.slane %v1463_v9, 2 }
 0xe5a   : > { %v1465_v23 = vadd.f32 %v1464_v13, %v1463_v9 }
 0xe5c   : > { %v1466_v38 = vrot.slane %v1465_v23, 1 }
 0xe5e   : > { %v1467_v57 = vadd.f32 %v1466_v38, %v1465_v23 }
 0xe60   : > { %1735 = vpush %v1467_v57 }
 0xe91   : > { %s1736_s23 = spop %1735 }
 0xe92   : > { %s1471_s24 = smul.f32 0.125, %s1736_s23 }
 0xe94   : > { %1473 = sst [smem:[#allocation8]] %s1471_s24 }
 0xe95 PF: > { %p1741_p7 = scmp.eq.s32.totalorder %s1964_s28, 1  ;;  %s1848_s0 = scalar_lea.hbm %s2332_s13, 16 }
 0xe96   : > { %p1849_p8 = scmp.ne.s32.totalorder %s2332_s13, %s1848_s0  ;;  %p1854_p11 = scmp.lt.u32.totalorder %s1848_s0, %s2332_s13 }
 0xe98   : > { %p1850_p9 = pnand %p1849_p8, %p1741_p7 }
 0xe9a   : > { %p1851_p10 = pneg %p1850_p9 }
 0xe9c   : > { %p1856_p12 = pnand %p1854_p11, %p1851_p10 }
 0xe9e   : > { %1859 = shalt.err (!%p1856_p12)
}
 0xe9f   : > { %s1884_s18 = smov [#allocation8]  }
 0xea0   : > { %1738 = dma.smem_to_hbm (%p1741_p7), %s1884_s18, 16, %s2332_s13, [#allocation9]  }
 0xea1   : > { %1865 = dma.done.wait (%p1741_p7), [#allocation9], 16  }
 0xea2   : > { %1867 = vsyncadd (%p1741_p7), [#allocation9], 4294967280 }
 0xea3   : > { %1487 = sfence }
 0xea4 PF: > { %s25_s27 = sadd.s32 1, %s1870_s27  }
 0xea5   : > { %p22_p13 = scmp.ge.s32.totalorder %s25_s27, 4  }
 0xea7   :  { %24 = sbr.rel (!%p22_p13) target bundleno = 3 (0x3), region = 114 }
 0xeae   :  { %1493 = vsyncpa [#allocation9], 1 }
 0xeaf   :  { %1495 = vsyncpa [#allocation9 + $0x1], 1 }

</bundles_post_ra>
